<compile_context>
chip_gen: v7x
topology: tpu7x:2x2x1
jax: 0.10.0
libtpu: 0.0.40
codegen_flags: <defaults>
</compile_context>

<pallas_src>
import functools
from dataclasses import dataclass

import jax
import jax.numpy as jnp
from jax.experimental import pallas as pl
from jax.experimental.pallas import tpu as pltpu


@dataclass
class ModelArgs:
    vocab_size: int = 64
    dim: int = 32
    n_head: int = 4
    n_local_heads: int = 2          # KV heads (GQA)
    head_dim: int = 8               # dim // n_head
    intermediate_size: int = 64
    num_experts: int = 8
    num_activated_experts: int = 2
    n_layer: int = 2
    block_size: int = 32            # rope table length
    rope_base: int = 10000
    norm_eps: float = 1e-5
    cache_len: int = 16


# ----------------------------- Pallas kernels ------------------------------ #

def _rmsnorm_matmul_kernel(x_ref, g_ref, w_ref, o_ref, *, eps):
    """y = rmsnorm(x) @ W, fused (single VMEM block at these shapes)."""
    x = x_ref[...]
    ms = jnp.mean(x * x, axis=-1, keepdims=True)
    xn = x * jax.lax.rsqrt(ms + eps) * g_ref[...]
    o_ref[...] = jnp.dot(xn, w_ref[...], preferred_element_type=jnp.float32)


def fused_rmsnorm_matmul(x, g, w, eps):
    T, D = x.shape
    N = w.shape[1]
    return pl.pallas_call(
        functools.partial(_rmsnorm_matmul_kernel, eps=eps),
        out_shape=jax.ShapeDtypeStruct((T, N), jnp.float32),
        grid=(1,),
        in_specs=[pl.BlockSpec((T, D), lambda i: (0, 0)),
                  pl.BlockSpec((1, D), lambda i: (0, 0)),
                  pl.BlockSpec((D, N), lambda i: (0, 0))],
        out_specs=pl.BlockSpec((T, N), lambda i: (0, 0)),
    )(x, g.reshape(1, D), w)


def _rmsnorm_gate_kernel(x_ref, g_ref, wg_ref, xn_ref, s_ref, *, eps):
    """Emit both rmsnorm(x) (needed by the experts) and rmsnorm(x) @ gate."""
    x = x_ref[...]
    ms = jnp.mean(x * x, axis=-1, keepdims=True)
    xn = x * jax.lax.rsqrt(ms + eps) * g_ref[...]
    xn_ref[...] = xn
    s_ref[...] = jnp.dot(xn, wg_ref[...], preferred_element_type=jnp.float32)


def rmsnorm_gate(x, g, wg, eps):
    T, D = x.shape
    E = wg.shape[1]
    return pl.pallas_call(
        functools.partial(_rmsnorm_gate_kernel, eps=eps),
        out_shape=(jax.ShapeDtypeStruct((T, D), jnp.float32),
                   jax.ShapeDtypeStruct((T, E), jnp.float32)),
        grid=(1,),
        in_specs=[pl.BlockSpec((T, D), lambda i: (0, 0)),
                  pl.BlockSpec((1, D), lambda i: (0, 0)),
                  pl.BlockSpec((D, E), lambda i: (0, 0))],
        out_specs=(pl.BlockSpec((T, D), lambda i: (0, 0)),
                   pl.BlockSpec((T, E), lambda i: (0, 0))),
    )(x, g.reshape(1, D), wg)


def _attn_wo_kernel(q_ref, kn_ref, vn_ref, mask_ref, wo_ref, kc_ref, vc_ref,
                    o_ref, kco_ref, vco_ref, *, rep):
    """Per-batch attention: in-place KV-cache update (aliased output), all H
    heads with in-kernel GQA indexing, softmax with EUP reciprocal, lane-dense
    (S, H*Dh) head concat and fused wo projection -> (S, dim) output block."""
    H = q_ref.shape[1]
    S = kn_ref.shape[2]

    # KV-cache update: write new K/V at slots [0, S) and keep the rest.
    kco_ref[0, :, :S, :] = kn_ref[0]
    kco_ref[0, :, S:, :] = kc_ref[0, :, S:, :]
    vco_ref[0, :, :S, :] = vn_ref[0]
    vco_ref[0, :, S:, :] = vc_ref[0, :, S:, :]
    k_all = kco_ref[0]                              # (KVH, L, Dh) updated
    v_all = vco_ref[0]

    mask = mask_ref[...]                            # (S, L)
    dn_t = (((1,), (1,)), ((), ()))                 # contract head_dim (K^T)

    outs = []
    for h in range(H):                              # static unroll over heads
        g = h // rep                                # GQA: query head -> kv head
        qh = q_ref[0, h]                            # (S, Dh), scale pre-folded
        s = jax.lax.dot_general(qh, k_all[g], dn_t,
                                preferred_element_type=jnp.float32)
        s = s + mask
        s = s - jnp.max(s, axis=-1, keepdims=True)
        p = jnp.exp(s)
        p = p * pl.reciprocal(jnp.sum(p, axis=-1, keepdims=True), approx=True)
        outs.append(jnp.dot(p, v_all[g], preferred_element_type=jnp.float32))
    attn = jnp.concatenate(outs, axis=-1)           # (S, H*Dh) lane-dense
    o_ref[0] = jnp.dot(attn, wo_ref[...], preferred_element_type=jnp.float32)


def attention(q, k_new, v_new, mask, wo, k_cache, v_cache, rep):
    B, H, S, Dh = q.shape
    KVH, L = k_cache.shape[1], k_cache.shape[2]
    D = wo.shape[1]
    return pl.pallas_call(
        functools.partial(_attn_wo_kernel, rep=rep),
        out_shape=(jax.ShapeDtypeStruct((B, S, D), jnp.float32),
                   jax.ShapeDtypeStruct(k_cache.shape, k_cache.dtype),
                   jax.ShapeDtypeStruct(v_cache.shape, v_cache.dtype)),
        grid=(B,),
        in_specs=[
            pl.BlockSpec((1, H, S, Dh), lambda b: (b, 0, 0, 0)),
            pl.BlockSpec((1, KVH, S, Dh), lambda b: (b, 0, 0, 0)),
            pl.BlockSpec((1, KVH, S, Dh), lambda b: (b, 0, 0, 0)),
            pl.BlockSpec((S, L), lambda b: (0, 0)),        # mask passed once
            pl.BlockSpec((H * Dh, D), lambda b: (0, 0)),   # wo, constant block
            pl.BlockSpec((1, KVH, L, Dh), lambda b: (b, 0, 0, 0)),
            pl.BlockSpec((1, KVH, L, Dh), lambda b: (b, 0, 0, 0)),
        ],
        out_specs=(
            pl.BlockSpec((1, S, D), lambda b: (b, 0, 0)),
            pl.BlockSpec((1, KVH, L, Dh), lambda b: (b, 0, 0, 0)),
            pl.BlockSpec((1, KVH, L, Dh), lambda b: (b, 0, 0, 0)),
        ),
        # In-place cache update: k_cache (arg 5) -> out 1, v_cache (arg 6) -> out 2
        input_output_aliases={5: 1, 6: 2},
        compiler_params=pltpu.CompilerParams(
            dimension_semantics=("parallel",)),
    )(q, k_new, v_new, mask, wo, k_cache, v_cache)


def _moe_combine_kernel(xn_ref, cw_ref, w1_ref, w3_ref, w2_ref, o_ref):
    """Per-expert FFN with the routing combine fused in: the (T, D) output is a
    resident accumulator across the expert grid axis."""
    @pl.when(pl.program_id(0) == 0)
    def _():
        o_ref[...] = jnp.zeros_like(o_ref)
    xn = xn_ref[...]                                 # (T, D)
    h1 = jnp.dot(xn, w1_ref[0], preferred_element_type=jnp.float32)   # (T, I)
    h1 = h1 * jax.nn.sigmoid(h1)                     # SiLU
    h3 = jnp.dot(xn, w3_ref[0], preferred_element_type=jnp.float32)
    y = jnp.dot(h1 * h3, w2_ref[0], preferred_element_type=jnp.float32)  # (T,D)
    o_ref[...] += cw_ref[0] * y                      # (T,1) combine weights


def moe_combine(xn, cw, w1t, w3t, w2t):
    T, D = xn.shape
    E, _, inter = w1t.shape                          # pre-transposed (E, D, I)
    return pl.pallas_call(
        _moe_combine_kernel,
        out_shape=jax.ShapeDtypeStruct((T, D), jnp.float32),
        grid=(E,),
        in_specs=[
            pl.BlockSpec((T, D), lambda e: (0, 0)),
            pl.BlockSpec((1, T, 1), lambda e: (e, 0, 0)),
            pl.BlockSpec((1, D, inter), lambda e: (e, 0, 0)),
            pl.BlockSpec((1, D, inter), lambda e: (e, 0, 0)),
            pl.BlockSpec((1, inter, D), lambda e: (e, 0, 0)),
        ],
        out_specs=pl.BlockSpec((T, D), lambda e: (0, 0)),   # resident accumulator
        compiler_params=pltpu.CompilerParams(
            dimension_semantics=("arbitrary",)),
    )(xn, cw, w1t, w3t, w2t)


# ------------------------------ JAX glue ----------------------------------- #

def precompute_freqs_cis(seq_len, n_elem, base=10000):
    freqs = 1.0 / (base ** (jnp.arange(0, n_elem, 2)[: n_elem // 2]
                            .astype(jnp.float32) / n_elem))
    t = jnp.arange(seq_len, dtype=jnp.float32)
    freqs = jnp.outer(t, freqs)                   # (seq_len, n_elem//2)
    return jnp.cos(freqs), jnp.sin(freqs)         # polar -> (cos, sin)


def apply_rotary_emb(x, cos, sin):
    # x: (B, S, H, Dh); cos/sin: (B, S, Dh//2)
    B, S, H, Dh = x.shape
    xs = x.reshape(B, S, H, Dh // 2, 2)
    x0, x1 = xs[..., 0], xs[..., 1]
    c = cos[:, :, None, :]
    s = sin[:, :, None, :]
    o0 = x0 * c - x1 * s
    o1 = x1 * c + x0 * s
    return jnp.stack([o0, o1], axis=-1).reshape(B, S, H, Dh)


def attention_block(x, layer, cos, sin, mask, cache, cfg):
    B, S, D = x.shape
    H, KVH, Dh = cfg.n_head, cfg.n_local_heads, cfg.head_dim
    xf = x.reshape(B * S, D)
    # Fused attention_norm + concatenated QKV projection (one pallas_call).
    qkv = fused_rmsnorm_matmul(xf, layer["attention_norm"], layer["wqkv"],
                               cfg.norm_eps)
    nq, nkv = H * Dh, KVH * Dh
    q = qkv[:, :nq].reshape(B, S, H, Dh)
    k = qkv[:, nq:nq + nkv].reshape(B, S, KVH, Dh)
    v = qkv[:, nq + nkv:].reshape(B, S, KVH, Dh)
    q = apply_rotary_emb(q, cos, sin)     # 1/sqrt(Dh) already folded into wq
    k = apply_rotary_emb(k, cos, sin)
    q = jnp.transpose(q, (0, 2, 1, 3))    # (B, H, S, Dh)
    k = jnp.transpose(k, (0, 2, 1, 3))    # (B, KVH, S, Dh)
    v = jnp.transpose(v, (0, 2, 1, 3))

    k_cache, v_cache = cache
    out, k_cache, v_cache = attention(q, k, v, mask, layer["wo"],
                                      k_cache, v_cache, rep=H // KVH)
    return out, (k_cache, v_cache)        # out: (B, S, D), wo already applied


def moe_block(h, layer, cfg):
    B, S, D = h.shape
    hf = h.reshape(B * S, D)
    # Fused ffn_norm + gate projection; also returns the normed activations.
    xn, scores = rmsnorm_gate(hf, layer["ffn_norm"], layer["gate"],
                              cfg.norm_eps)
    ew = jax.nn.softmax(scores, axis=-1)
    ew, ei = jax.lax.top_k(ew, cfg.num_activated_experts)          # (T, A)
    ew = ew / jnp.sum(ew, axis=-1, keepdims=True)
    # Dense (T, E) combine weights (zero for non-selected experts); the combine
    # itself is fused into the expert kernel (matches the long-seq-len path of
    # ConditionalFeedForward, which computes all experts densely).
    cw = jnp.sum(jax.nn.one_hot(ei, cfg.num_experts, dtype=jnp.float32)
                 * ew[..., None], axis=1)                           # (T, E)
    cw = jnp.transpose(cw)[:, :, None]                              # (E, T, 1)
    out = moe_combine(xn, cw, layer["w1t"], layer["w3t"], layer["w2t"])
    return out.reshape(B, S, D)


def transformer_forward(params, cfg, idx, input_pos, caches, mask):
    B, S = idx.shape
    x = params["tok_embeddings"][idx]               # (B, S, D)
    cos = params["freqs_cos"][input_pos]            # (B, S, Dh//2)
    sin = params["freqs_sin"][input_pos]
    new_caches = []
    for layer, cache in zip(params["layers"], caches):
        attn, cache = attention_block(x, layer, cos, sin, mask, cache, cfg)
        h = x + attn
        x = h + moe_block(h, layer, cfg)
        new_caches.append(cache)
    logits = fused_rmsnorm_matmul(x.reshape(B * S, -1), params["norm"],
                                  params["output"], cfg.norm_eps)
    return logits.reshape(B, S, -1), new_caches


# --------------------------- deterministic init ----------------------------- #

def init_params(cfg, key):
    def nrm(k, shape, scale=0.02):
        return scale * jax.random.normal(k, shape, dtype=jnp.float32)

    keys = jax.random.split(key, 3 + cfg.n_layer)
    params = {
        "tok_embeddings": nrm(keys[0], (cfg.vocab_size, cfg.dim)),
        "output": nrm(keys[1], (cfg.dim, cfg.vocab_size)),
        "norm": jnp.ones((cfg.dim,), jnp.float32),
    }
    cos, sin = precompute_freqs_cis(cfg.block_size, cfg.dim // cfg.n_head,
                                    cfg.rope_base)
    params["freqs_cos"] = cos
    params["freqs_sin"] = sin

    attn_scale = 1.0 / (cfg.head_dim ** 0.5)
    layers = []
    for li in range(cfg.n_layer):
        lk = jax.random.split(keys[3 + li], 8)
        wq = nrm(lk[0], (cfg.dim, cfg.n_head * cfg.head_dim))
        wk = nrm(lk[1], (cfg.dim, cfg.n_local_heads * cfg.head_dim))
        wv = nrm(lk[2], (cfg.dim, cfg.n_local_heads * cfg.head_dim))
        # Torch layout: w1/w3 (E, I, D), w2 (E, D, I); stored pre-transposed so
        # every in-kernel dot is a plain row-major (M,K)@(K,N) MXU contraction.
        w1 = nrm(lk[5], (cfg.num_experts, cfg.intermediate_size, cfg.dim))
        w2 = nrm(lk[6], (cfg.num_experts, cfg.dim, cfg.intermediate_size))
        w3 = nrm(lk[7], (cfg.num_experts, cfg.intermediate_size, cfg.dim))
        layers.append({
            # 1/sqrt(head_dim) folded into wq (rope is linear, so scaling
            # commutes); wq|wk|wv concatenated for one fused projection.
            "wqkv": jnp.concatenate([wq * attn_scale, wk, wv], axis=1),
            "wo": nrm(lk[3], (cfg.n_head * cfg.head_dim, cfg.dim)),
            "gate": nrm(lk[4], (cfg.dim, cfg.num_experts)),
            "w1t": jnp.transpose(w1, (0, 2, 1)),     # (E, D, I)
            "w3t": jnp.transpose(w3, (0, 2, 1)),     # (E, D, I)
            "w2t": jnp.transpose(w2, (0, 2, 1)),     # (E, I, D)
            "attention_norm": jnp.ones((cfg.dim,), jnp.float32),
            "ffn_norm": jnp.ones((cfg.dim,), jnp.float32),
        })
    params["layers"] = layers
    return params


if __name__ == "__main__":
    cfg = ModelArgs()
    key = jax.random.PRNGKey(0)
    pkey, ikey = jax.random.split(key)
    params = init_params(cfg, pkey)

    B, S = 2, 8
    idx = jax.random.randint(ikey, (B, S), 0, cfg.vocab_size, dtype=jnp.int32)
    input_pos = jnp.broadcast_to(jnp.arange(S, dtype=jnp.int32), (B, S))

    caches = [
        (jnp.zeros((B, cfg.n_local_heads, cfg.cache_len, cfg.head_dim),
                   jnp.float32),
         jnp.zeros((B, cfg.n_local_heads, cfg.cache_len, cfg.head_dim),
                   jnp.float32))
        for _ in range(cfg.n_layer)
    ]

    # Additive attention mask over cache slots: query i attends slot j iff j<=i.
    pos = jnp.arange(S)[:, None]
    slots = jnp.arange(cfg.cache_len)[None, :]
    mask = jnp.where(slots <= pos, 0.0, -1e9).astype(jnp.float32)   # (S, L)

    @jax.jit
    def fwd(p, tok, ipos, kv_caches, msk):
        return transformer_forward(p, cfg, tok, ipos, kv_caches, msk)

    logits, _ = fwd(params, idx, input_pos, caches, mask)
    logits = jax.block_until_ready(logits)

    assert logits.shape == (B, S, cfg.vocab_size), logits.shape
    assert bool(jnp.all(jnp.isfinite(logits)))
    print("KERNEL_OK")
</pallas_src>

<mosaic_0001>
module attributes {stable_mosaic.version = 11 : i64} {
  func.func @_rmsnorm_matmul_kernel(%arg0: i32, %arg1: memref<16x32xf32, #tpu.memory_space<vmem>>, %arg2: memref<1x32xf32, #tpu.memory_space<vmem>>, %arg3: memref<32x64xf32, #tpu.memory_space<vmem>>, %arg4: memref<16x64xf32, #tpu.memory_space<vmem>>) attributes {dimension_semantics = [#tpu.dimension_semantics<arbitrary>], iteration_bounds = array<i64: 1>, scalar_prefetch = 0 : i64, scratch_operands = 0 : i64, tpu.core_type = #tpu.core_type<tc>, window_params = [{pipeline_mode = #tpu.pipeline_mode<synchronous>, transform_indices = @transform_0, window_bounds = array<i64: 16, 32>}, {pipeline_mode = #tpu.pipeline_mode<synchronous>, transform_indices = @transform_1, window_bounds = array<i64: 1, 32>}, {pipeline_mode = #tpu.pipeline_mode<synchronous>, transform_indices = @transform_2, window_bounds = array<i64: 32, 64>}, {pipeline_mode = #tpu.pipeline_mode<synchronous>, transform_indices = @transform_3, window_bounds = array<i64: 16, 64>}]} {
    %c0 = arith.constant 0 : index
    %c0_0 = arith.constant 0 : index
    %0 = vector.load %arg1[%c0, %c0_0] : memref<16x32xf32, #tpu.memory_space<vmem>>, vector<16x32xf32>
    %1 = arith.mulf %0, %0 : vector<16x32xf32>
    %cst = arith.constant dense<0.000000e+00> : vector<16xf32>
    %2 = vector.multi_reduction <add>, %1, %cst [1] : vector<16x32xf32> to vector<16xf32>
    %3 = vector.shape_cast %2 : vector<16xf32> to vector<16x1xf32>
    %cst_1 = arith.constant 3.200000e+01 : f32
    %4 = vector.broadcast %cst_1 : f32 to vector<16x1xf32>
    %5 = arith.divf %3, %4 : vector<16x1xf32>
    %cst_2 = arith.constant 9.99999974E-6 : f32
    %6 = vector.broadcast %cst_2 : f32 to vector<16x1xf32>
    %7 = arith.addf %5, %6 : vector<16x1xf32>
    %8 = math.rsqrt %7 : vector<16x1xf32>
    %9 = vector.broadcast %8 : vector<16x1xf32> to vector<16x32xf32>
    %10 = arith.mulf %0, %9 : vector<16x32xf32>
    %c0_3 = arith.constant 0 : index
    %c0_4 = arith.constant 0 : index
    %11 = vector.load %arg2[%c0_3, %c0_4] : memref<1x32xf32, #tpu.memory_space<vmem>>, vector<1x32xf32>
    %12 = vector.broadcast %11 : vector<1x32xf32> to vector<16x32xf32>
    %13 = arith.mulf %10, %12 : vector<16x32xf32>
    %c0_5 = arith.constant 0 : index
    %c0_6 = arith.constant 0 : index
    %14 = vector.load %arg3[%c0_5, %c0_6] : memref<32x64xf32, #tpu.memory_space<vmem>>, vector<32x64xf32>
    %cst_7 = arith.constant dense<0.000000e+00> : vector<16x64xf32>
    %15 = tpu.matmul %13, %14, %cst_7 {dimension_numbers = #tpu.dot_dimension_numbers<[1], [0], [0], [1], [0, 0, 1, 1], [], []>} : vector<16x32xf32>, vector<32x64xf32>, vector<16x64xf32> -> vector<16x64xf32>
    %c0_8 = arith.constant 0 : index
    %c0_9 = arith.constant 0 : index
    %16 = vector.load %arg4[%c0_8, %c0_9] : memref<16x64xf32, #tpu.memory_space<vmem>>, vector<16x64xf32>
    tpu.vector_store %arg4[%c0_8, %c0_9], %15 {strides = array<i32>} : memref<16x64xf32, #tpu.memory_space<vmem>>, vector<16x64xf32>,
    return
  }
  func.func @transform_0(%arg0: i32) -> (i32, i32) {
    %c0_i32 = arith.constant 0 : i32
    %c0_i32_0 = arith.constant 0 : i32
    %c0_i32_1 = arith.constant 0 : i32
    return %c0_i32, %c0_i32_0 : i32, i32
  }
  func.func @transform_1(%arg0: i32) -> (i32, i32) {
    %c0_i32 = arith.constant 0 : i32
    %c0_i32_0 = arith.constant 0 : i32
    %c0_i32_1 = arith.constant 0 : i32
    return %c0_i32, %c0_i32_0 : i32, i32
  }
  func.func @transform_2(%arg0: i32) -> (i32, i32) {
    %c0_i32 = arith.constant 0 : i32
    %c0_i32_0 = arith.constant 0 : i32
    %c0_i32_1 = arith.constant 0 : i32
    return %c0_i32, %c0_i32_0 : i32, i32
  }
  func.func @transform_3(%arg0: i32) -> (i32, i32) {
    %c0_i32 = arith.constant 0 : i32
    %c0_i32_0 = arith.constant 0 : i32
    %c0_i32_1 = arith.constant 0 : i32
    return %c0_i32, %c0_i32_0 : i32, i32
  }
}

module attributes {stable_mosaic.version = 11 : i64} {
  func.func @_rmsnorm_gate_kernel(%arg0: i32, %arg1: memref<16x32xf32, #tpu.memory_space<vmem>>, %arg2: memref<1x32xf32, #tpu.memory_space<vmem>>, %arg3: memref<32x8xf32, #tpu.memory_space<vmem>>, %arg4: memref<16x32xf32, #tpu.memory_space<vmem>>, %arg5: memref<16x8xf32, #tpu.memory_space<vmem>>) attributes {dimension_semantics = [#tpu.dimension_semantics<arbitrary>], iteration_bounds = array<i64: 1>, scalar_prefetch = 0 : i64, scratch_operands = 0 : i64, tpu.core_type = #tpu.core_type<tc>, window_params = [{pipeline_mode = #tpu.pipeline_mode<synchronous>, transform_indices = @transform_0, window_bounds = array<i64: 16, 32>}, {pipeline_mode = #tpu.pipeline_mode<synchronous>, transform_indices = @transform_1, window_bounds = array<i64: 1, 32>}, {pipeline_mode = #tpu.pipeline_mode<synchronous>, transform_indices = @transform_2, window_bounds = array<i64: 32, 8>}, {pipeline_mode = #tpu.pipeline_mode<synchronous>, transform_indices = @transform_3, window_bounds = array<i64: 16, 32>}, {pipeline_mode = #tpu.pipeline_mode<synchronous>, transform_indices = @transform_4, window_bounds = array<i64: 16, 8>}]} {
    %c0 = arith.constant 0 : index
    %c0_0 = arith.constant 0 : index
    %0 = vector.load %arg1[%c0, %c0_0] : memref<16x32xf32, #tpu.memory_space<vmem>>, vector<16x32xf32>
    %1 = arith.mulf %0, %0 : vector<16x32xf32>
    %cst = arith.constant dense<0.000000e+00> : vector<16xf32>
    %2 = vector.multi_reduction <add>, %1, %cst [1] : vector<16x32xf32> to vector<16xf32>
    %3 = vector.shape_cast %2 : vector<16xf32> to vector<16x1xf32>
    %cst_1 = arith.constant 3.200000e+01 : f32
    %4 = vector.broadcast %cst_1 : f32 to vector<16x1xf32>
    %5 = arith.divf %3, %4 : vector<16x1xf32>
    %cst_2 = arith.constant 9.99999974E-6 : f32
    %6 = vector.broadcast %cst_2 : f32 to vector<16x1xf32>
    %7 = arith.addf %5, %6 : vector<16x1xf32>
    %8 = math.rsqrt %7 : vector<16x1xf32>
    %9 = vector.broadcast %8 : vector<16x1xf32> to vector<16x32xf32>
    %10 = arith.mulf %0, %9 : vector<16x32xf32>
    %c0_3 = arith.constant 0 : index
    %c0_4 = arith.constant 0 : index
    %11 = vector.load %arg2[%c0_3, %c0_4] : memref<1x32xf32, #tpu.memory_space<vmem>>, vector<1x32xf32>
    %12 = vector.broadcast %11 : vector<1x32xf32> to vector<16x32xf32>
    %13 = arith.mulf %10, %12 : vector<16x32xf32>
    %c0_5 = arith.constant 0 : index
    %c0_6 = arith.constant 0 : index
    %14 = vector.load %arg4[%c0_5, %c0_6] : memref<16x32xf32, #tpu.memory_space<vmem>>, vector<16x32xf32>
    tpu.vector_store %arg4[%c0_5, %c0_6], %13 {strides = array<i32>} : memref<16x32xf32, #tpu.memory_space<vmem>>, vector<16x32xf32>,
    %c0_7 = arith.constant 0 : index
    %c0_8 = arith.constant 0 : index
    %15 = vector.load %arg3[%c0_7, %c0_8] : memref<32x8xf32, #tpu.memory_space<vmem>>, vector<32x8xf32>
    %cst_9 = arith.constant dense<0.000000e+00> : vector<16x8xf32>
    %16 = tpu.matmul %13, %15, %cst_9 {dimension_numbers = #tpu.dot_dimension_numbers<[1], [0], [0], [1], [0, 0, 1, 1], [], []>} : vector<16x32xf32>, vector<32x8xf32>, vector<16x8xf32> -> vector<16x8xf32>
    %c0_10 = arith.constant 0 : index
    %c0_11 = arith.constant 0 : index
    %17 = vector.load %arg5[%c0_10, %c0_11] : memref<16x8xf32, #tpu.memory_space<vmem>>, vector<16x8xf32>
    tpu.vector_store %arg5[%c0_10, %c0_11], %16 {strides = array<i32>} : memref<16x8xf32, #tpu.memory_space<vmem>>, vector<16x8xf32>,
    return
  }
  func.func @transform_0(%arg0: i32) -> (i32, i32) {
    %c0_i32 = arith.constant 0 : i32
    %c0_i32_0 = arith.constant 0 : i32
    %c0_i32_1 = arith.constant 0 : i32
    return %c0_i32, %c0_i32_0 : i32, i32
  }
  func.func @transform_1(%arg0: i32) -> (i32, i32) {
    %c0_i32 = arith.constant 0 : i32
    %c0_i32_0 = arith.constant 0 : i32
    %c0_i32_1 = arith.constant 0 : i32
    return %c0_i32, %c0_i32_0 : i32, i32
  }
  func.func @transform_2(%arg0: i32) -> (i32, i32) {
    %c0_i32 = arith.constant 0 : i32
    %c0_i32_0 = arith.constant 0 : i32
    %c0_i32_1 = arith.constant 0 : i32
    return %c0_i32, %c0_i32_0 : i32, i32
  }
  func.func @transform_3(%arg0: i32) -> (i32, i32) {
    %c0_i32 = arith.constant 0 : i32
    %c0_i32_0 = arith.constant 0 : i32
    %c0_i32_1 = arith.constant 0 : i32
    return %c0_i32, %c0_i32_0 : i32, i32
  }
  func.func @transform_4(%arg0: i32) -> (i32, i32) {
    %c0_i32 = arith.constant 0 : i32
    %c0_i32_0 = arith.constant 0 : i32
    %c0_i32_1 = arith.constant 0 : i32
    return %c0_i32, %c0_i32_0 : i32, i32
  }
}

module attributes {stable_mosaic.version = 11 : i64} {
  func.func @_attn_wo_kernel(%arg0: i32, %arg1: memref<1x4x8x8xf32, #tpu.memory_space<vmem>>, %arg2: memref<1x2x8x8xf32, #tpu.memory_space<vmem>>, %arg3: memref<1x2x8x8xf32, #tpu.memory_space<vmem>>, %arg4: memref<8x16xf32, #tpu.memory_space<vmem>>, %arg5: memref<32x32xf32, #tpu.memory_space<vmem>>, %arg6: memref<1x2x16x8xf32, #tpu.memory_space<vmem>>, %arg7: memref<1x2x16x8xf32, #tpu.memory_space<vmem>>, %arg8: memref<1x8x32xf32, #tpu.memory_space<vmem>>, %arg9: memref<1x2x16x8xf32, #tpu.memory_space<vmem>>, %arg10: memref<1x2x16x8xf32, #tpu.memory_space<vmem>>) attributes {dimension_semantics = [#tpu.dimension_semantics<parallel>], iteration_bounds = array<i64: 2>, scalar_prefetch = 0 : i64, scratch_operands = 0 : i64, tpu.core_type = #tpu.core_type<tc>, window_params = [{transform_indices = @transform_0, window_bounds = array<i64: 1, 4, 8, 8>}, {transform_indices = @transform_1, window_bounds = array<i64: 1, 2, 8, 8>}, {transform_indices = @transform_2, window_bounds = array<i64: 1, 2, 8, 8>}, {pipeline_mode = #tpu.pipeline_mode<synchronous>, transform_indices = @transform_3, window_bounds = array<i64: 8, 16>}, {pipeline_mode = #tpu.pipeline_mode<synchronous>, transform_indices = @transform_4, window_bounds = array<i64: 32, 32>}, {transform_indices = @transform_5, window_bounds = array<i64: 1, 2, 16, 8>}, {transform_indices = @transform_6, window_bounds = array<i64: 1, 2, 16, 8>}, {transform_indices = @transform_7, window_bounds = array<i64: 1, 8, 32>}, {transform_indices = @transform_8, window_bounds = array<i64: 1, 2, 16, 8>}, {transform_indices = @transform_9, window_bounds = array<i64: 1, 2, 16, 8>}]} {
    %c0 = arith.constant 0 : index
    %c0_0 = arith.constant 0 : index
    %c0_1 = arith.constant 0 : index
    %c0_2 = arith.constant 0 : index
    %0 = vector.load %arg2[%c0, %c0_0, %c0_1, %c0_2] : memref<1x2x8x8xf32, #tpu.memory_space<vmem>>, vector<1x2x8x8xf32>
    %1 = vector.shape_cast %0 : vector<1x2x8x8xf32> to vector<2x8x8xf32>
    %c0_3 = arith.constant 0 : index
    %c0_4 = arith.constant 0 : index
    %c0_5 = arith.constant 0 : index
    %c0_6 = arith.constant 0 : index
    %2 = vector.load %arg9[%c0_3, %c0_4, %c0_5, %c0_6] : memref<1x2x16x8xf32, #tpu.memory_space<vmem>>, vector<1x2x8x8xf32>
    %3 = vector.shape_cast %2 : vector<1x2x8x8xf32> to vector<2x8x8xf32>
    %4 = vector.shape_cast %1 : vector<2x8x8xf32> to vector<1x2x8x8xf32>
    tpu.vector_store %arg9[%c0_3, %c0_4, %c0_5, %c0_6], %4 {strides = array<i32>} : memref<1x2x16x8xf32, #tpu.memory_space<vmem>>, vector<1x2x8x8xf32>,
    %c0_7 = arith.constant 0 : index
    %c0_8 = arith.constant 0 : index
    %c8 = arith.constant 8 : index
    %c0_9 = arith.constant 0 : index
    %5 = vector.load %arg6[%c0_7, %c0_8, %c8, %c0_9] : memref<1x2x16x8xf32, #tpu.memory_space<vmem>>, vector<1x2x8x8xf32>
    %6 = vector.shape_cast %5 : vector<1x2x8x8xf32> to vector<2x8x8xf32>
    %c0_10 = arith.constant 0 : index
    %c0_11 = arith.constant 0 : index
    %c8_12 = arith.constant 8 : index
    %c0_13 = arith.constant 0 : index
    %7 = vector.load %arg9[%c0_10, %c0_11, %c8_12, %c0_13] : memref<1x2x16x8xf32, #tpu.memory_space<vmem>>, vector<1x2x8x8xf32>
    %8 = vector.shape_cast %7 : vector<1x2x8x8xf32> to vector<2x8x8xf32>
    %9 = vector.shape_cast %6 : vector<2x8x8xf32> to vector<1x2x8x8xf32>
    tpu.vector_store %arg9[%c0_10, %c0_11, %c8_12, %c0_13], %9 {strides = array<i32>} : memref<1x2x16x8xf32, #tpu.memory_space<vmem>>, vector<1x2x8x8xf32>,
    %c0_14 = arith.constant 0 : index
    %c0_15 = arith.constant 0 : index
    %c0_16 = arith.constant 0 : index
    %c0_17 = arith.constant 0 : index
    %10 = vector.load %arg3[%c0_14, %c0_15, %c0_16, %c0_17] : memref<1x2x8x8xf32, #tpu.memory_space<vmem>>, vector<1x2x8x8xf32>
    %11 = vector.shape_cast %10 : vector<1x2x8x8xf32> to vector<2x8x8xf32>
    %c0_18 = arith.constant 0 : index
    %c0_19 = arith.constant 0 : index
    %c0_20 = arith.constant 0 : index
    %c0_21 = arith.constant 0 : index
    %12 = vector.load %arg10[%c0_18, %c0_19, %c0_20, %c0_21] : memref<1x2x16x8xf32, #tpu.memory_space<vmem>>, vector<1x2x8x8xf32>
    %13 = vector.shape_cast %12 : vector<1x2x8x8xf32> to vector<2x8x8xf32>
    %14 = vector.shape_cast %11 : vector<2x8x8xf32> to vector<1x2x8x8xf32>
    tpu.vector_store %arg10[%c0_18, %c0_19, %c0_20, %c0_21], %14 {strides = array<i32>} : memref<1x2x16x8xf32, #tpu.memory_space<vmem>>, vector<1x2x8x8xf32>,
    %c0_22 = arith.constant 0 : index
    %c0_23 = arith.constant 0 : index
    %c8_24 = arith.constant 8 : index
    %c0_25 = arith.constant 0 : index
    %15 = vector.load %arg7[%c0_22, %c0_23, %c8_24, %c0_25] : memref<1x2x16x8xf32, #tpu.memory_space<vmem>>, vector<1x2x8x8xf32>
    %16 = vector.shape_cast %15 : vector<1x2x8x8xf32> to vector<2x8x8xf32>
    %c0_26 = arith.constant 0 : index
    %c0_27 = arith.constant 0 : index
    %c8_28 = arith.constant 8 : index
    %c0_29 = arith.constant 0 : index
    %17 = vector.load %arg10[%c0_26, %c0_27, %c8_28, %c0_29] : memref<1x2x16x8xf32, #tpu.memory_space<vmem>>, vector<1x2x8x8xf32>
    %18 = vector.shape_cast %17 : vector<1x2x8x8xf32> to vector<2x8x8xf32>
    %19 = vector.shape_cast %16 : vector<2x8x8xf32> to vector<1x2x8x8xf32>
    tpu.vector_store %arg10[%c0_26, %c0_27, %c8_28, %c0_29], %19 {strides = array<i32>} : memref<1x2x16x8xf32, #tpu.memory_space<vmem>>, vector<1x2x8x8xf32>,
    %c0_30 = arith.constant 0 : index
    %c0_31 = arith.constant 0 : index
    %c0_32 = arith.constant 0 : index
    %c0_33 = arith.constant 0 : index
    %20 = vector.load %arg9[%c0_30, %c0_31, %c0_32, %c0_33] : memref<1x2x16x8xf32, #tpu.memory_space<vmem>>, vector<1x2x16x8xf32>
    %21 = vector.shape_cast %20 : vector<1x2x16x8xf32> to vector<2x16x8xf32>
    %c0_34 = arith.constant 0 : index
    %c0_35 = arith.constant 0 : index
    %c0_36 = arith.constant 0 : index
    %c0_37 = arith.constant 0 : index
    %22 = vector.load %arg10[%c0_34, %c0_35, %c0_36, %c0_37] : memref<1x2x16x8xf32, #tpu.memory_space<vmem>>, vector<1x2x16x8xf32>
    %23 = vector.shape_cast %22 : vector<1x2x16x8xf32> to vector<2x16x8xf32>
    %c0_38 = arith.constant 0 : index
    %c0_39 = arith.constant 0 : index
    %24 = vector.load %arg4[%c0_38, %c0_39] : memref<8x16xf32, #tpu.memory_space<vmem>>, vector<8x16xf32>
    %c0_40 = arith.constant 0 : index
    %c0_41 = arith.constant 0 : index
    %c0_42 = arith.constant 0 : index
    %c0_43 = arith.constant 0 : index
    %25 = vector.load %arg1[%c0_40, %c0_41, %c0_42, %c0_43] : memref<1x4x8x8xf32, #tpu.memory_space<vmem>>, vector<1x1x8x8xf32>
    %26 = vector.shape_cast %25 : vector<1x1x8x8xf32> to vector<8x8xf32>
    %27 = vector.extract_strided_slice %21 {offsets = [0, 0, 0], sizes = [1, 16, 8], strides = [1, 1, 1]} : vector<2x16x8xf32> to vector<1x16x8xf32>
    %28 = vector.shape_cast %27 : vector<1x16x8xf32> to vector<16x8xf32>
    %cst = arith.constant dense<0.000000e+00> : vector<8x16xf32>
    %29 = tpu.matmul %26, %28, %cst {dimension_numbers = #tpu.dot_dimension_numbers<[1], [1], [0], [0], [0, 0, 1, 0], [], []>} : vector<8x8xf32>, vector<16x8xf32>, vector<8x16xf32> -> vector<8x16xf32>
    %30 = arith.addf %29, %24 : vector<8x16xf32>
    %cst_44 = arith.constant dense<0xFF800000> : vector<8xf32>
    %31 = vector.multi_reduction <maximumf>, %30, %cst_44 [1] : vector<8x16xf32> to vector<8xf32>
    %32 = vector.shape_cast %31 : vector<8xf32> to vector<8x1xf32>
    %33 = vector.broadcast %32 : vector<8x1xf32> to vector<8x16xf32>
    %34 = arith.subf %30, %33 : vector<8x16xf32>
    %35 = math.exp %34 : vector<8x16xf32>
    %cst_45 = arith.constant dense<0.000000e+00> : vector<8xf32>
    %36 = vector.multi_reduction <add>, %35, %cst_45 [1] : vector<8x16xf32> to vector<8xf32>
    %37 = vector.shape_cast %36 : vector<8xf32> to vector<8x1xf32>
    %38 = tpu.reciprocal %37 {approx = true} : vector<8x1xf32> -> vector<8x1xf32>
    %39 = vector.broadcast %38 : vector<8x1xf32> to vector<8x16xf32>
    %40 = arith.mulf %35, %39 : vector<8x16xf32>
    %41 = vector.extract_strided_slice %23 {offsets = [0, 0, 0], sizes = [1, 16, 8], strides = [1, 1, 1]} : vector<2x16x8xf32> to vector<1x16x8xf32>
    %42 = vector.shape_cast %41 : vector<1x16x8xf32> to vector<16x8xf32>
    %cst_46 = arith.constant dense<0.000000e+00> : vector<8x8xf32>
    %43 = tpu.matmul %40, %42, %cst_46 {dimension_numbers = #tpu.dot_dimension_numbers<[1], [0], [0], [1], [0, 0, 1, 1], [], []>} : vector<8x16xf32>, vector<16x8xf32>, vector<8x8xf32> -> vector<8x8xf32>
    %c0_47 = arith.constant 0 : index
    %c1 = arith.constant 1 : index
    %c0_48 = arith.constant 0 : index
    %c0_49 = arith.constant 0 : index
    %44 = vector.load %arg1[%c0_47, %c1, %c0_48, %c0_49] : memref<1x4x8x8xf32, #tpu.memory_space<vmem>>, vector<1x1x8x8xf32>
    %45 = vector.shape_cast %44 : vector<1x1x8x8xf32> to vector<8x8xf32>
    %46 = vector.extract_strided_slice %21 {offsets = [0, 0, 0], sizes = [1, 16, 8], strides = [1, 1, 1]} : vector<2x16x8xf32> to vector<1x16x8xf32>
    %47 = vector.shape_cast %46 : vector<1x16x8xf32> to vector<16x8xf32>
    %cst_50 = arith.constant dense<0.000000e+00> : vector<8x16xf32>
    %48 = tpu.matmul %45, %47, %cst_50 {dimension_numbers = #tpu.dot_dimension_numbers<[1], [1], [0], [0], [0, 0, 1, 0], [], []>} : vector<8x8xf32>, vector<16x8xf32>, vector<8x16xf32> -> vector<8x16xf32>
    %49 = arith.addf %48, %24 : vector<8x16xf32>
    %cst_51 = arith.constant dense<0xFF800000> : vector<8xf32>
    %50 = vector.multi_reduction <maximumf>, %49, %cst_51 [1] : vector<8x16xf32> to vector<8xf32>
    %51 = vector.shape_cast %50 : vector<8xf32> to vector<8x1xf32>
    %52 = vector.broadcast %51 : vector<8x1xf32> to vector<8x16xf32>
    %53 = arith.subf %49, %52 : vector<8x16xf32>
    %54 = math.exp %53 : vector<8x16xf32>
    %cst_52 = arith.constant dense<0.000000e+00> : vector<8xf32>
    %55 = vector.multi_reduction <add>, %54, %cst_52 [1] : vector<8x16xf32> to vector<8xf32>
    %56 = vector.shape_cast %55 : vector<8xf32> to vector<8x1xf32>
    %57 = tpu.reciprocal %56 {approx = true} : vector<8x1xf32> -> vector<8x1xf32>
    %58 = vector.broadcast %57 : vector<8x1xf32> to vector<8x16xf32>
    %59 = arith.mulf %54, %58 : vector<8x16xf32>
    %60 = vector.extract_strided_slice %23 {offsets = [0, 0, 0], sizes = [1, 16, 8], strides = [1, 1, 1]} : vector<2x16x8xf32> to vector<1x16x8xf32>
    %61 = vector.shape_cast %60 : vector<1x16x8xf32> to vector<16x8xf32>
    %cst_53 = arith.constant dense<0.000000e+00> : vector<8x8xf32>
    %62 = tpu.matmul %59, %61, %cst_53 {dimension_numbers = #tpu.dot_dimension_numbers<[1], [0], [0], [1], [0, 0, 1, 1], [], []>} : vector<8x16xf32>, vector<16x8xf32>, vector<8x8xf32> -> vector<8x8xf32>
    %c0_54 = arith.constant 0 : index
    %c2 = arith.constant 2 : index
    %c0_55 = arith.constant 0 : index
    %c0_56 = arith.constant 0 : index
    %63 = vector.load %arg1[%c0_54, %c2, %c0_55, %c0_56] : memref<1x4x8x8xf32, #tpu.memory_space<vmem>>, vector<1x1x8x8xf32>
    %64 = vector.shape_cast %63 : vector<1x1x8x8xf32> to vector<8x8xf32>
    %65 = vector.extract_strided_slice %21 {offsets = [1, 0, 0], sizes = [1, 16, 8], strides = [1, 1, 1]} : vector<2x16x8xf32> to vector<1x16x8xf32>
    %66 = vector.shape_cast %65 : vector<1x16x8xf32> to vector<16x8xf32>
    %cst_57 = arith.constant dense<0.000000e+00> : vector<8x16xf32>
    %67 = tpu.matmul %64, %66, %cst_57 {dimension_numbers = #tpu.dot_dimension_numbers<[1], [1], [0], [0], [0, 0, 1, 0], [], []>} : vector<8x8xf32>, vector<16x8xf32>, vector<8x16xf32> -> vector<8x16xf32>
    %68 = arith.addf %67, %24 : vector<8x16xf32>
    %cst_58 = arith.constant dense<0xFF800000> : vector<8xf32>
    %69 = vector.multi_reduction <maximumf>, %68, %cst_58 [1] : vector<8x16xf32> to vector<8xf32>
    %70 = vector.shape_cast %69 : vector<8xf32> to vector<8x1xf32>
    %71 = vector.broadcast %70 : vector<8x1xf32> to vector<8x16xf32>
    %72 = arith.subf %68, %71 : vector<8x16xf32>
    %73 = math.exp %72 : vector<8x16xf32>
    %cst_59 = arith.constant dense<0.000000e+00> : vector<8xf32>
    %74 = vector.multi_reduction <add>, %73, %cst_59 [1] : vector<8x16xf32> to vector<8xf32>
    %75 = vector.shape_cast %74 : vector<8xf32> to vector<8x1xf32>
    %76 = tpu.reciprocal %75 {approx = true} : vector<8x1xf32> -> vector<8x1xf32>
    %77 = vector.broadcast %76 : vector<8x1xf32> to vector<8x16xf32>
    %78 = arith.mulf %73, %77 : vector<8x16xf32>
    %79 = vector.extract_strided_slice %23 {offsets = [1, 0, 0], sizes = [1, 16, 8], strides = [1, 1, 1]} : vector<2x16x8xf32> to vector<1x16x8xf32>
    %80 = vector.shape_cast %79 : vector<1x16x8xf32> to vector<16x8xf32>
    %cst_60 = arith.constant dense<0.000000e+00> : vector<8x8xf32>
    %81 = tpu.matmul %78, %80, %cst_60 {dimension_numbers = #tpu.dot_dimension_numbers<[1], [0], [0], [1], [0, 0, 1, 1], [], []>} : vector<8x16xf32>, vector<16x8xf32>, vector<8x8xf32> -> vector<8x8xf32>
    %c0_61 = arith.constant 0 : index
    %c3 = arith.constant 3 : index
    %c0_62 = arith.constant 0 : index
    %c0_63 = arith.constant 0 : index
    %82 = vector.load %arg1[%c0_61, %c3, %c0_62, %c0_63] : memref<1x4x8x8xf32, #tpu.memory_space<vmem>>, vector<1x1x8x8xf32>
    %83 = vector.shape_cast %82 : vector<1x1x8x8xf32> to vector<8x8xf32>
    %84 = vector.extract_strided_slice %21 {offsets = [1, 0, 0], sizes = [1, 16, 8], strides = [1, 1, 1]} : vector<2x16x8xf32> to vector<1x16x8xf32>
    %85 = vector.shape_cast %84 : vector<1x16x8xf32> to vector<16x8xf32>
    %cst_64 = arith.constant dense<0.000000e+00> : vector<8x16xf32>
    %86 = tpu.matmul %83, %85, %cst_64 {dimension_numbers = #tpu.dot_dimension_numbers<[1], [1], [0], [0], [0, 0, 1, 0], [], []>} : vector<8x8xf32>, vector<16x8xf32>, vector<8x16xf32> -> vector<8x16xf32>
    %87 = arith.addf %86, %24 : vector<8x16xf32>
    %cst_65 = arith.constant dense<0xFF800000> : vector<8xf32>
    %88 = vector.multi_reduction <maximumf>, %87, %cst_65 [1] : vector<8x16xf32> to vector<8xf32>
    %89 = vector.shape_cast %88 : vector<8xf32> to vector<8x1xf32>
    %90 = vector.broadcast %89 : vector<8x1xf32> to vector<8x16xf32>
    %91 = arith.subf %87, %90 : vector<8x16xf32>
    %92 = math.exp %91 : vector<8x16xf32>
    %cst_66 = arith.constant dense<0.000000e+00> : vector<8xf32>
    %93 = vector.multi_reduction <add>, %92, %cst_66 [1] : vector<8x16xf32> to vector<8xf32>
    %94 = vector.shape_cast %93 : vector<8xf32> to vector<8x1xf32>
    %95 = tpu.reciprocal %94 {approx = true} : vector<8x1xf32> -> vector<8x1xf32>
    %96 = vector.broadcast %95 : vector<8x1xf32> to vector<8x16xf32>
    %97 = arith.mulf %92, %96 : vector<8x16xf32>
    %98 = vector.extract_strided_slice %23 {offsets = [1, 0, 0], sizes = [1, 16, 8], strides = [1, 1, 1]} : vector<2x16x8xf32> to vector<1x16x8xf32>
    %99 = vector.shape_cast %98 : vector<1x16x8xf32> to vector<16x8xf32>
    %cst_67 = arith.constant dense<0.000000e+00> : vector<8x8xf32>
    %100 = tpu.matmul %97, %99, %cst_67 {dimension_numbers = #tpu.dot_dimension_numbers<[1], [0], [0], [1], [0, 0, 1, 1], [], []>} : vector<8x16xf32>, vector<16x8xf32>, vector<8x8xf32> -> vector<8x8xf32>
    %101 = tpu.concatenate %43, %62, %81, %100 in 1 : vector<8x8xf32>, vector<8x8xf32>, vector<8x8xf32>, vector<8x8xf32> -> vector<8x32xf32>
    %c0_68 = arith.constant 0 : index
    %c0_69 = arith.constant 0 : index
    %102 = vector.load %arg5[%c0_68, %c0_69] : memref<32x32xf32, #tpu.memory_space<vmem>>, vector<32x32xf32>
    %cst_70 = arith.constant dense<0.000000e+00> : vector<8x32xf32>
    %103 = tpu.matmul %101, %102, %cst_70 {dimension_numbers = #tpu.dot_dimension_numbers<[1], [0], [0], [1], [0, 0, 1, 1], [], []>} : vector<8x32xf32>, vector<32x32xf32>, vector<8x32xf32> -> vector<8x32xf32>
    %c0_71 = arith.constant 0 : index
    %c0_72 = arith.constant 0 : index
    %c0_73 = arith.constant 0 : index
    %104 = vector.load %arg8[%c0_71, %c0_72, %c0_73] : memref<1x8x32xf32, #tpu.memory_space<vmem>>, vector<1x8x32xf32>
    %105 = vector.shape_cast %104 : vector<1x8x32xf32> to vector<8x32xf32>
    %106 = vector.shape_cast %103 : vector<8x32xf32> to vector<1x8x32xf32>
    tpu.vector_store %arg8[%c0_71, %c0_72, %c0_73], %106 {strides = array<i32>} : memref<1x8x32xf32, #tpu.memory_space<vmem>>, vector<1x8x32xf32>,
    return
  }
  func.func @transform_0(%arg0: i32) -> (i32, i32, i32, i32) {
    %c0_i32 = arith.constant 0 : i32
    %c0_i32_0 = arith.constant 0 : i32
    %c0_i32_1 = arith.constant 0 : i32
    %c0_i32_2 = arith.constant 0 : i32
    return %arg0, %c0_i32, %c0_i32_0, %c0_i32_1 : i32, i32, i32, i32
  }
  func.func @transform_1(%arg0: i32) -> (i32, i32, i32, i32) {
    %c0_i32 = arith.constant 0 : i32
    %c0_i32_0 = arith.constant 0 : i32
    %c0_i32_1 = arith.constant 0 : i32
    %c0_i32_2 = arith.constant 0 : i32
    return %arg0, %c0_i32, %c0_i32_0, %c0_i32_1 : i32, i32, i32, i32
  }
  func.func @transform_2(%arg0: i32) -> (i32, i32, i32, i32) {
    %c0_i32 = arith.constant 0 : i32
    %c0_i32_0 = arith.constant 0 : i32
    %c0_i32_1 = arith.constant 0 : i32
    %c0_i32_2 = arith.constant 0 : i32
    return %arg0, %c0_i32, %c0_i32_0, %c0_i32_1 : i32, i32, i32, i32
  }
  func.func @transform_3(%arg0: i32) -> (i32, i32) {
    %c0_i32 = arith.constant 0 : i32
    %c0_i32_0 = arith.constant 0 : i32
    %c0_i32_1 = arith.constant 0 : i32
    return %c0_i32, %c0_i32_0 : i32, i32
  }
  func.func @transform_4(%arg0: i32) -> (i32, i32) {
    %c0_i32 = arith.constant 0 : i32
    %c0_i32_0 = arith.constant 0 : i32
    %c0_i32_1 = arith.constant 0 : i32
    return %c0_i32, %c0_i32_0 : i32, i32
  }
  func.func @transform_5(%arg0: i32) -> (i32, i32, i32, i32) {
    %c0_i32 = arith.constant 0 : i32
    %c0_i32_0 = arith.constant 0 : i32
    %c0_i32_1 = arith.constant 0 : i32
    %c0_i32_2 = arith.constant 0 : i32
    return %arg0, %c0_i32, %c0_i32_0, %c0_i32_1 : i32, i32, i32, i32
  }
  func.func @transform_6(%arg0: i32) -> (i32, i32, i32, i32) {
    %c0_i32 = arith.constant 0 : i32
    %c0_i32_0 = arith.constant 0 : i32
    %c0_i32_1 = arith.constant 0 : i32
    %c0_i32_2 = arith.constant 0 : i32
    return %arg0, %c0_i32, %c0_i32_0, %c0_i32_1 : i32, i32, i32, i32
  }
  func.func @transform_7(%arg0: i32) -> (i32, i32, i32) {
    %c0_i32 = arith.constant 0 : i32
    %c0_i32_0 = arith.constant 0 : i32
    %c0_i32_1 = arith.constant 0 : i32
    return %arg0, %c0_i32, %c0_i32_0 : i32, i32, i32
  }
  func.func @transform_8(%arg0: i32) -> (i32, i32, i32, i32) {
    %c0_i32 = arith.constant 0 : i32
    %c0_i32_0 = arith.constant 0 : i32
    %c0_i32_1 = arith.constant 0 : i32
    %c0_i32_2 = arith.constant 0 : i32
    return %arg0, %c0_i32, %c0_i32_0, %c0_i32_1 : i32, i32, i32, i32
  }
  func.func @transform_9(%arg0: i32) -> (i32, i32, i32, i32) {
    %c0_i32 = arith.constant 0 : i32
    %c0_i32_0 = arith.constant 0 : i32
    %c0_i32_1 = arith.constant 0 : i32
    %c0_i32_2 = arith.constant 0 : i32
    return %arg0, %c0_i32, %c0_i32_0, %c0_i32_1 : i32, i32, i32, i32
  }
}

module attributes {stable_mosaic.version = 11 : i64} {
  func.func @_moe_combine_kernel(%arg0: i32, %arg1: memref<16x32xf32, #tpu.memory_space<vmem>>, %arg2: memref<1x16x1xf32, #tpu.memory_space<vmem>>, %arg3: memref<1x32x64xf32, #tpu.memory_space<vmem>>, %arg4: memref<1x32x64xf32, #tpu.memory_space<vmem>>, %arg5: memref<1x64x32xf32, #tpu.memory_space<vmem>>, %arg6: memref<16x32xf32, #tpu.memory_space<vmem>>) attributes {dimension_semantics = [#tpu.dimension_semantics<arbitrary>], iteration_bounds = array<i64: 8>, scalar_prefetch = 0 : i64, scratch_operands = 0 : i64, tpu.core_type = #tpu.core_type<tc>, window_params = [{pipeline_mode = #tpu.pipeline_mode<synchronous>, transform_indices = @transform_0, window_bounds = array<i64: 16, 32>}, {transform_indices = @transform_1, window_bounds = array<i64: 1, 16, 1>}, {transform_indices = @transform_2, window_bounds = array<i64: 1, 32, 64>}, {transform_indices = @transform_3, window_bounds = array<i64: 1, 32, 64>}, {transform_indices = @transform_4, window_bounds = array<i64: 1, 64, 32>}, {pipeline_mode = #tpu.pipeline_mode<synchronous>, transform_indices = @transform_5, window_bounds = array<i64: 16, 32>}]} {
    %c0_i32 = arith.constant 0 : i32
    %0 = arith.cmpi eq, %arg0, %c0_i32 : i32
    %1 = arith.extui %0 : i1 to i32
    %c0_i32_0 = arith.constant 0 : i32
    %2 = arith.cmpi ne, %1, %c0_i32_0 : i32
    scf.if %2 {
      %cst_21 = arith.constant 0.000000e+00 : f32
      %27 = vector.broadcast %cst_21 : f32 to vector<16x32xf32>
      %c0_22 = arith.constant 0 : index
      %c0_23 = arith.constant 0 : index
      %28 = vector.load %arg6[%c0_22, %c0_23] : memref<16x32xf32, #tpu.memory_space<vmem>>, vector<16x32xf32>
      tpu.vector_store %arg6[%c0_22, %c0_23], %27 {strides = array<i32>} : memref<16x32xf32, #tpu.memory_space<vmem>>, vector<16x32xf32>,
    } else {
    }
    %c0 = arith.constant 0 : index
    %c0_1 = arith.constant 0 : index
    %3 = vector.load %arg1[%c0, %c0_1] : memref<16x32xf32, #tpu.memory_space<vmem>>, vector<16x32xf32>
    %c0_2 = arith.constant 0 : index
    %c0_3 = arith.constant 0 : index
    %c0_4 = arith.constant 0 : index
    %4 = vector.load %arg3[%c0_2, %c0_3, %c0_4] : memref<1x32x64xf32, #tpu.memory_space<vmem>>, vector<1x32x64xf32>
    %5 = vector.shape_cast %4 : vector<1x32x64xf32> to vector<32x64xf32>
    %cst = arith.constant dense<0.000000e+00> : vector<16x64xf32>
    %6 = tpu.matmul %3, %5, %cst {dimension_numbers = #tpu.dot_dimension_numbers<[1], [0], [0], [1], [0, 0, 1, 1], [], []>} : vector<16x32xf32>, vector<32x64xf32>, vector<16x64xf32> -> vector<16x64xf32>
    %7 = arith.negf %6 : vector<16x64xf32>
    %8 = math.exp %7 : vector<16x64xf32>
    %cst_5 = arith.constant 1.000000e+00 : f32
    %9 = vector.broadcast %cst_5 : f32 to vector<16x64xf32>
    %10 = arith.addf %9, %8 : vector<16x64xf32>
    %11 = arith.divf %9, %10 : vector<16x64xf32>
    %12 = arith.mulf %6, %11 : vector<16x64xf32>
    %c0_6 = arith.constant 0 : index
    %c0_7 = arith.constant 0 : index
    %c0_8 = arith.constant 0 : index
    %13 = vector.load %arg4[%c0_6, %c0_7, %c0_8] : memref<1x32x64xf32, #tpu.memory_space<vmem>>, vector<1x32x64xf32>
    %14 = vector.shape_cast %13 : vector<1x32x64xf32> to vector<32x64xf32>
    %cst_9 = arith.constant dense<0.000000e+00> : vector<16x64xf32>
    %15 = tpu.matmul %3, %14, %cst_9 {dimension_numbers = #tpu.dot_dimension_numbers<[1], [0], [0], [1], [0, 0, 1, 1], [], []>} : vector<16x32xf32>, vector<32x64xf32>, vector<16x64xf32> -> vector<16x64xf32>
    %16 = arith.mulf %12, %15 : vector<16x64xf32>
    %c0_10 = arith.constant 0 : index
    %c0_11 = arith.constant 0 : index
    %c0_12 = arith.constant 0 : index
    %17 = vector.load %arg5[%c0_10, %c0_11, %c0_12] : memref<1x64x32xf32, #tpu.memory_space<vmem>>, vector<1x64x32xf32>
    %18 = vector.shape_cast %17 : vector<1x64x32xf32> to vector<64x32xf32>
    %cst_13 = arith.constant dense<0.000000e+00> : vector<16x32xf32>
    %19 = tpu.matmul %16, %18, %cst_13 {dimension_numbers = #tpu.dot_dimension_numbers<[1], [0], [0], [1], [0, 0, 1, 1], [], []>} : vector<16x64xf32>, vector<64x32xf32>, vector<16x32xf32> -> vector<16x32xf32>
    %c0_14 = arith.constant 0 : index
    %c0_15 = arith.constant 0 : index
    %20 = vector.load %arg6[%c0_14, %c0_15] : memref<16x32xf32, #tpu.memory_space<vmem>>, vector<16x32xf32>
    %c0_16 = arith.constant 0 : index
    %c0_17 = arith.constant 0 : index
    %c0_18 = arith.constant 0 : index
    %21 = vector.load %arg2[%c0_16, %c0_17, %c0_18] : memref<1x16x1xf32, #tpu.memory_space<vmem>>, vector<1x16x1xf32>
    %22 = vector.shape_cast %21 : vector<1x16x1xf32> to vector<16x1xf32>
    %23 = vector.broadcast %22 : vector<16x1xf32> to vector<16x32xf32>
    %24 = arith.mulf %23, %19 : vector<16x32xf32>
    %25 = arith.addf %20, %24 : vector<16x32xf32>
    %c0_19 = arith.constant 0 : index
    %c0_20 = arith.constant 0 : index
    %26 = vector.load %arg6[%c0_19, %c0_20] : memref<16x32xf32, #tpu.memory_space<vmem>>, vector<16x32xf32>
    tpu.vector_store %arg6[%c0_19, %c0_20], %25 {strides = array<i32>} : memref<16x32xf32, #tpu.memory_space<vmem>>, vector<16x32xf32>,
    return
  }
  func.func @transform_0(%arg0: i32) -> (i32, i32) {
    %c0_i32 = arith.constant 0 : i32
    %c0_i32_0 = arith.constant 0 : i32
    %c0_i32_1 = arith.constant 0 : i32
    return %c0_i32, %c0_i32_0 : i32, i32
  }
  func.func @transform_1(%arg0: i32) -> (i32, i32, i32) {
    %c0_i32 = arith.constant 0 : i32
    %c0_i32_0 = arith.constant 0 : i32
    %c0_i32_1 = arith.constant 0 : i32
    return %arg0, %c0_i32, %c0_i32_0 : i32, i32, i32
  }
  func.func @transform_2(%arg0: i32) -> (i32, i32, i32) {
    %c0_i32 = arith.constant 0 : i32
    %c0_i32_0 = arith.constant 0 : i32
    %c0_i32_1 = arith.constant 0 : i32
    return %arg0, %c0_i32, %c0_i32_0 : i32, i32, i32
  }
  func.func @transform_3(%arg0: i32) -> (i32, i32, i32) {
    %c0_i32 = arith.constant 0 : i32
    %c0_i32_0 = arith.constant 0 : i32
    %c0_i32_1 = arith.constant 0 : i32
    return %arg0, %c0_i32, %c0_i32_0 : i32, i32, i32
  }
  func.func @transform_4(%arg0: i32) -> (i32, i32, i32) {
    %c0_i32 = arith.constant 0 : i32
    %c0_i32_0 = arith.constant 0 : i32
    %c0_i32_1 = arith.constant 0 : i32
    return %arg0, %c0_i32, %c0_i32_0 : i32, i32, i32
  }
  func.func @transform_5(%arg0: i32) -> (i32, i32) {
    %c0_i32 = arith.constant 0 : i32
    %c0_i32_0 = arith.constant 0 : i32
    %c0_i32_1 = arith.constant 0 : i32
    return %c0_i32, %c0_i32_0 : i32, i32
  }
}

module attributes {stable_mosaic.version = 11 : i64} {
  func.func @_rmsnorm_matmul_kernel(%arg0: i32, %arg1: memref<16x32xf32, #tpu.memory_space<vmem>>, %arg2: memref<1x32xf32, #tpu.memory_space<vmem>>, %arg3: memref<32x64xf32, #tpu.memory_space<vmem>>, %arg4: memref<16x64xf32, #tpu.memory_space<vmem>>) attributes {dimension_semantics = [#tpu.dimension_semantics<arbitrary>], iteration_bounds = array<i64: 1>, scalar_prefetch = 0 : i64, scratch_operands = 0 : i64, tpu.core_type = #tpu.core_type<tc>, window_params = [{pipeline_mode = #tpu.pipeline_mode<synchronous>, transform_indices = @transform_0, window_bounds = array<i64: 16, 32>}, {pipeline_mode = #tpu.pipeline_mode<synchronous>, transform_indices = @transform_1, window_bounds = array<i64: 1, 32>}, {pipeline_mode = #tpu.pipeline_mode<synchronous>, transform_indices = @transform_2, window_bounds = array<i64: 32, 64>}, {pipeline_mode = #tpu.pipeline_mode<synchronous>, transform_indices = @transform_3, window_bounds = array<i64: 16, 64>}]} {
    %c0 = arith.constant 0 : index
    %c0_0 = arith.constant 0 : index
    %0 = vector.load %arg1[%c0, %c0_0] : memref<16x32xf32, #tpu.memory_space<vmem>>, vector<16x32xf32>
    %1 = arith.mulf %0, %0 : vector<16x32xf32>
    %cst = arith.constant dense<0.000000e+00> : vector<16xf32>
    %2 = vector.multi_reduction <add>, %1, %cst [1] : vector<16x32xf32> to vector<16xf32>
    %3 = vector.shape_cast %2 : vector<16xf32> to vector<16x1xf32>
    %cst_1 = arith.constant 3.200000e+01 : f32
    %4 = vector.broadcast %cst_1 : f32 to vector<16x1xf32>
    %5 = arith.divf %3, %4 : vector<16x1xf32>
    %cst_2 = arith.constant 9.99999974E-6 : f32
    %6 = vector.broadcast %cst_2 : f32 to vector<16x1xf32>
    %7 = arith.addf %5, %6 : vector<16x1xf32>
    %8 = math.rsqrt %7 : vector<16x1xf32>
    %9 = vector.broadcast %8 : vector<16x1xf32> to vector<16x32xf32>
    %10 = arith.mulf %0, %9 : vector<16x32xf32>
    %c0_3 = arith.constant 0 : index
    %c0_4 = arith.constant 0 : index
    %11 = vector.load %arg2[%c0_3, %c0_4] : memref<1x32xf32, #tpu.memory_space<vmem>>, vector<1x32xf32>
    %12 = vector.broadcast %11 : vector<1x32xf32> to vector<16x32xf32>
    %13 = arith.mulf %10, %12 : vector<16x32xf32>
    %c0_5 = arith.constant 0 : index
    %c0_6 = arith.constant 0 : index
    %14 = vector.load %arg3[%c0_5, %c0_6] : memref<32x64xf32, #tpu.memory_space<vmem>>, vector<32x64xf32>
    %cst_7 = arith.constant dense<0.000000e+00> : vector<16x64xf32>
    %15 = tpu.matmul %13, %14, %cst_7 {dimension_numbers = #tpu.dot_dimension_numbers<[1], [0], [0], [1], [0, 0, 1, 1], [], []>} : vector<16x32xf32>, vector<32x64xf32>, vector<16x64xf32> -> vector<16x64xf32>
    %c0_8 = arith.constant 0 : index
    %c0_9 = arith.constant 0 : index
    %16 = vector.load %arg4[%c0_8, %c0_9] : memref<16x64xf32, #tpu.memory_space<vmem>>, vector<16x64xf32>
    tpu.vector_store %arg4[%c0_8, %c0_9], %15 {strides = array<i32>} : memref<16x64xf32, #tpu.memory_space<vmem>>, vector<16x64xf32>,
    return
  }
  func.func @transform_0(%arg0: i32) -> (i32, i32) {
    %c0_i32 = arith.constant 0 : i32
    %c0_i32_0 = arith.constant 0 : i32
    %c0_i32_1 = arith.constant 0 : i32
    return %c0_i32, %c0_i32_0 : i32, i32
  }
  func.func @transform_1(%arg0: i32) -> (i32, i32) {
    %c0_i32 = arith.constant 0 : i32
    %c0_i32_0 = arith.constant 0 : i32
    %c0_i32_1 = arith.constant 0 : i32
    return %c0_i32, %c0_i32_0 : i32, i32
  }
  func.func @transform_2(%arg0: i32) -> (i32, i32) {
    %c0_i32 = arith.constant 0 : i32
    %c0_i32_0 = arith.constant 0 : i32
    %c0_i32_1 = arith.constant 0 : i32
    return %c0_i32, %c0_i32_0 : i32, i32
  }
  func.func @transform_3(%arg0: i32) -> (i32, i32) {
    %c0_i32 = arith.constant 0 : i32
    %c0_i32_0 = arith.constant 0 : i32
    %c0_i32_1 = arith.constant 0 : i32
    return %c0_i32, %c0_i32_0 : i32, i32
  }
}

</mosaic_0001>

<bundles_post_ra>
// kernel: fwd.11
= control target key start
LH: loop header
LB: loop body
LE: loop exit
PB: predicated region body
PF: predicated region fallthrough
CT: control target
= control target key end

     0   :  { %vm20_vm0 = vcmask 261120   ;;  %vm132_vm1 = vcmask 64512   ;;  %s239_s0 = inlined_call_operand.vmem [shape: f32[16,32], index: 0, kind: input, shape index: {}]   ;;  %s240_s2 = inlined_call_operand.vmem [shape: f32[32,8], index: 2, kind: input, shape index: {}]   ;;  %s241_s1 = inlined_call_operand.vmem [shape: f32[1,32], index: 1, kind: input, shape index: {}]   ;;  %s242_s3 = inlined_call_operand.vmem [shape: f32[16,32], index: 3, kind: output, shape index: {0}]   ;;  %s243_s4 = inlined_call_operand.vmem [shape: f32[16,8], index: 4, kind: output, shape index: {1}]  }
   0x1   :  { %v16_v0 = vld [vmem:[%s239_s0] sm:$0xff]  ;;  %v17_v1 = vld [vmem:[%s239_s0 + $0x8] sm:$0xff]  ;;  %v49_v8 = vld [vmem:[%s240_s2 + $0x10] sm:$0xff] }
   0x2   :  { %v18_v2 = vmul.f32 %v16_v0, %v16_v0  ;;  %v19_v3 = vmul.f32 %v17_v1, %v17_v1  ;;  %v47_v6 = vld [vmem:[%s240_s2] sm:$0xff]  ;;  %v48_v7 = vld [vmem:[%s240_s2 + $0x8] sm:$0xff]  ;;  %v50_v10 = vld [vmem:[%s240_s2 + $0x18] sm:$0xff] }
   0x3   :  { %v163_v9 = vpack.c.bf16 %v48_v7, %v47_v6  ;;  %v167_v11 = vpack.c.bf16 %v50_v10, %v49_v8  ;;  %v143_v19 = vld [vmem:[%s241_s1] ss:$0 sm:$0xff] }
   0x4   :  { %v21_v4 = vsel %vm20_vm0, %v18_v2, 0.0  ;;  %v24_v5 = vsel %vm20_vm0, %v19_v3, 0.0 }
   0x5   :  { %22 = vadd.xlane.f32.xlu0 %v21_v4  ;;  %164 = vmatprep.subr.bf16.mxu0 %v163_v9 }
   0x6   :  { %166 = vmatpush3.bf16.msra.mxu0 %v163_v9 }
   0x7   :  { %168 = vmatprep.subr.bf16.mxu0 %v167_v11 }
   0x9   :  { %25 = vadd.xlane.f32.xlu0 %v24_v5 }
   0xa   :  { %170 = vmatpush3.bf16.msra.mxu0 %v167_v11 }
  0x92   :  { %v23_v12 = vpop.xlane.xlu0 %22 }
  0x93   :  { %v28_v13 = vmul.f32 0.03125, %v23_v12 }
  0x95   :  { %v30_v14 = vadd.f32 1e-05, %v28_v13 }
  0x96   :  { %v26_v15 = vpop.xlane.xlu0 %25 }
  0x97   :  { %171 = vrsqrt.f32 %v30_v14  ;;  %v29_v16 = vmul.f32 0.03125, %v26_v15 }
  0x99   :  { %v31_v17 = vadd.f32 1e-05, %v29_v16 }
  0x9b   :  { %173 = vrsqrt.f32 %v31_v17 }
  0xa1   :  { %v172_v18 = vpop.eup %171 }
  0xa2   :  { %v34_v20 = vmul.f32 %v172_v18, %v16_v0 }
  0xa4   :  { %v43_v21 = vmul.f32 %v143_v19, %v34_v20 }
  0xa5   :  { %v174_v22 = vpop.eup %173 }
  0xa6   :  { %v35_v23 = vmul.f32 %v174_v22, %v17_v1  ;;  %45 = vst.msk [vmem:[%s242_s3] sm:$0xff] %vm20_vm0, %v43_v21  ;;  %160 = vmatprep.mubr.msk.f32.mxu0 %vm20_vm0, %v43_v21 }
  0xa8   :  { %v44_v24 = vmul.f32 %v143_v19, %v35_v23 }
  0xaa   :  { %46 = vst.msk [vmem:[%s242_s3 + $0x8] sm:$0xff] %vm20_vm0, %v44_v24  ;;  %161 = vmatmul.mubr.msk.f32.vlgmr.msra.gmra.mrb[0].mxu0 %vm20_vm0, %v44_v24 }
 0x17d   :  { %v162_v25 = vpop.f32.mrb[0].mxu0 }
 0x17e   :  { %134 = vst.msk [vmem:[%s243_s4 + $0x8] sm:$0xff] %vm132_vm1, %v162_v25  ;;  %v123_v26 = vpop.f32.mrb[1].mxu0 }
 0x17f   :  { %133 = vst.msk [vmem:[%s243_s4] sm:$0xff] %vm132_vm1, %v123_v26 }

// kernel: fwd.9
= control target key start
LH: loop header
LB: loop body
LE: loop exit
PB: predicated region body
PF: predicated region fallthrough
CT: control target
= control target key end

     0   :  { %vm18_vm0 = vcmask 261120   ;;  %vm128_vm1 = vcmask 523264   ;;  %s218_s0 = inlined_call_operand.vmem [shape: f32[16,32], index: 0, kind: input, shape index: {}]   ;;  %s219_s2 = inlined_call_operand.vmem [shape: f32[32,64], index: 2, kind: input, shape index: {}]   ;;  %s220_s1 = inlined_call_operand.vmem [shape: f32[1,32], index: 1, kind: input, shape index: {}]   ;;  %s221_s3 = inlined_call_operand.vmem [shape: f32[16,64], index: 3, kind: output, shape index: {}]  }
   0x1   :  { %v14_v0 = vld [vmem:[%s218_s0] sm:$0xff]  ;;  %v15_v1 = vld [vmem:[%s218_s0 + $0x8] sm:$0xff]  ;;  %v45_v8 = vld [vmem:[%s219_s2 + $0x10] sm:$0xff] }
   0x2   :  { %v16_v2 = vmul.f32 %v14_v0, %v14_v0  ;;  %v17_v3 = vmul.f32 %v15_v1, %v15_v1  ;;  %v43_v6 = vld [vmem:[%s219_s2] sm:$0xff]  ;;  %v44_v7 = vld [vmem:[%s219_s2 + $0x8] sm:$0xff]  ;;  %v46_v10 = vld [vmem:[%s219_s2 + $0x18] sm:$0xff] }
   0x3   :  { %v155_v9 = vpack.c.bf16 %v44_v7, %v43_v6  ;;  %v159_v11 = vpack.c.bf16 %v46_v10, %v45_v8  ;;  %v135_v19 = vld [vmem:[%s220_s1] ss:$0 sm:$0xff] }
   0x4   :  { %v19_v4 = vsel %vm18_vm0, %v16_v2, 0.0  ;;  %v22_v5 = vsel %vm18_vm0, %v17_v3, 0.0 }
   0x5   :  { %20 = vadd.xlane.f32.xlu0 %v19_v4  ;;  %156 = vmatprep.subr.bf16.mxu0 %v155_v9 }
   0x6   :  { %158 = vmatpush3.bf16.msra.mxu0 %v155_v9 }
   0x7   :  { %160 = vmatprep.subr.bf16.mxu0 %v159_v11 }
   0x9   :  { %23 = vadd.xlane.f32.xlu0 %v22_v5 }
   0xa   :  { %162 = vmatpush3.bf16.msra.mxu0 %v159_v11 }
  0x92   :  { %v21_v12 = vpop.xlane.xlu0 %20 }
  0x93   :  { %v26_v13 = vmul.f32 0.03125, %v21_v12 }
  0x95   :  { %v28_v14 = vadd.f32 1e-05, %v26_v13 }
  0x96   :  { %v24_v15 = vpop.xlane.xlu0 %23 }
  0x97   :  { %163 = vrsqrt.f32 %v28_v14  ;;  %v27_v16 = vmul.f32 0.03125, %v24_v15 }
  0x99   :  { %v29_v17 = vadd.f32 1e-05, %v27_v16 }
  0x9b   :  { %165 = vrsqrt.f32 %v29_v17 }
  0xa1   :  { %v164_v18 = vpop.eup %163 }
  0xa2   :  { %v32_v20 = vmul.f32 %v164_v18, %v14_v0 }
  0xa4   :  { %v41_v21 = vmul.f32 %v135_v19, %v32_v20 }
  0xa5   :  { %v166_v22 = vpop.eup %165 }
  0xa6   :  { %v33_v23 = vmul.f32 %v166_v22, %v15_v1  ;;  %152 = vmatprep.mubr.msk.f32.mxu0 %vm18_vm0, %v41_v21 }
  0xa8   :  { %v42_v24 = vmul.f32 %v135_v19, %v33_v23 }
  0xaa   :  { %153 = vmatmul.mubr.msk.f32.vlgmr.msra.gmra.mrb[0].mxu0 %vm18_vm0, %v42_v24 }
 0x17d   :  { %v154_v25 = vpop.f32.mrb[0].mxu0 }
 0x17e   :  { %130 = vst.msk [vmem:[%s221_s3 + $0x8] sm:$0xff] %vm128_vm1, %v154_v25  ;;  %v119_v26 = vpop.f32.mrb[1].mxu0 }
 0x17f   :  { %129 = vst.msk [vmem:[%s221_s3] sm:$0xff] %vm128_vm1, %v119_v26 }

// kernel: fwd.10
= control target key start
LH: loop header
LB: loop body
LE: loop exit
PB: predicated region body
PF: predicated region fallthrough
CT: control target
= control target key end

     0   :  { %s1645_s30 = smov 0   ;;  %s1818_s0 = inlined_call_operand.vmem [shape: f32[2,4,8,8], index: 0, kind: input, shape index: {}]   ;;  %s1819_s1 = inlined_call_operand.vmem [shape: f32[2,2,8,8], index: 1, kind: input, shape index: {}]   ;;  %s1820_s2 = inlined_call_operand.vmem [shape: f32[2,2,8,8], index: 2, kind: input, shape index: {}]   ;;  %s1821_s3 = inlined_call_operand.vmem [shape: f32[8,16], index: 3, kind: input, shape index: {}]   ;;  %s1822_s4 = inlined_call_operand.vmem [shape: f32[32,32], index: 4, kind: input, shape index: {}]   ;;  %s1823_s5 = inlined_call_operand.vmem [shape: f32[2,2,16,8], index: 5, kind: input, shape index: {}, may-alias: {5,8}]   ;;  %s1824_s6 = inlined_call_operand.vmem [shape: f32[2,2,16,8], index: 6, kind: input, shape index: {}, may-alias: {6,9}]   ;;  %s1825_s7 = inlined_call_operand.vmem [shape: f32[2,8,32], index: 7, kind: output, shape index: {0}]   ;;  %s1826_s8 = inlined_call_operand.vmem [shape: f32[2,2,16,8], index: 8, kind: output, shape index: {1}, may-alias: {5,8}]   ;;  %s1827_s9 = inlined_call_operand.vmem [shape: f32[2,2,16,8], index: 9, kind: output, shape index: {2}, may-alias: {6,9}]  }
   0x1 LB: > { %s1372_s10 = sadd.s32 4294967295, %s1587_s30   ;;  %p1376_p0 = scmp.ge.s32.totalorder %s1587_s30, 1  ;;  %s1587_s30 = sphi %s1645_s30, %s20_s30  }
   0x2   : > { %p332_p1 = scmp.lt.s32.totalorder %s1587_s30, 3 }
   0x4   : > { %p333_p2 = pnand %p1376_p0, %p332_p1 }
   0x5   : > { %p397_p3 = scmp.lt.s32.totalorder (!%p333_p2), %s1372_s10, 1  ;;  %v1589_v0 = vmov (!%p333_p2), 0.0|0.0   ;;  %vm1590_vm0 = vmmov (!%p333_p2), 0   ;;  %v1591_v1 = vmov (!%p333_p2), 0.0   ;;  %vm438_vm1 = vcmask (!%p333_p2), 64512   ;;  %v1712_v11 = vld [vmem:[%s1821_s3] sm:$0xff] (!%p333_p2) }
   0x6   : > { %336 = sbr.rel (%p333_p2) target bundleno = 2192 (0x890), region = 48  ;;  %1517 = vmatprep.subr.bf16.mxu0 (!%p333_p2), %v1589_v0  ;;  %1454 = vmatprep.mubr.msk.f32.mxu0 (!%p333_p2), %vm1590_vm0, %v1591_v1  ;;  %vm1692_vm2 = vmpackc.low (!%p333_p2), %vm438_vm1, %vm438_vm1  ;;  %vm542_vm3 = vcmask (!%p333_p2), 130048   ;;  %s1594_s27 = smov (!%p333_p2), 24   ;;  %vm1124_vm4 = vcmask (!%p333_p2), 195584   ;;  %vm1130_vm5 = vcmask (!%p333_p2), 261120  }
   0x7   : > { %1521 = vmatprep.subr.bf16.mxu1 (!%p333_p2), %v1589_v0  ;;  %1461 = vmatprep.mubr.msk.f32.mxu1 (!%p333_p2), %vm1590_vm0, %v1591_v1 }
   0xd   : > { %s1831_s10 = smov (!%p397_p3, %s1372_s10), 1 }
   0xe   : > { %s1662_s11 = sshll.u32 %s1831_s10, 5  ;;  %s1415_s12 = sshll.u32 %s1831_s10, 4 }
   0xf   : > { %s406_s15 = scalar_lea.vmem %s1819_s1, %s1415_s12  ;;  %s1674_s18 = scalar_lea.vmem %s1826_s8, %s1662_s11 }
  0x10   : > { %v436_v2 = vld [vmem:[%s406_s15] sm:$0xff]  ;;  %v437_v3 = vld [vmem:[%s406_s15 + $0x8] sm:$0xff]  ;;  %s416_s21 = scalar_lea.vmem %s1823_s5, %s1662_s11  ;;  %s1702_s24 = scalar_lea.vmem %s1818_s0, %s1662_s11 }
  0x11   : > { %439 = vst.msk [vmem:[%s1674_s18] sm:$0xff] %vm438_vm1, %v436_v2  ;;  %440 = vst.msk [vmem:[%s1674_s18 + $0x10] sm:$0xff] %vm438_vm1, %v437_v3  ;;  %v462_v10 = vld [vmem:[%s1702_s24] sm:$0xff]  ;;  %s411_s29 = scalar_lea.vmem %s1820_s2, %s1415_s12  ;;  %s1726_s15 = scalar_lea.vmem %s1827_s9, %s1662_s11  ;;  %v1401_v31 = vld [vmem:[%s1702_s24 + $0x10] sm:$0xff] }
  0x12   : > { %v445_v21 = vld [vmem:[%s411_s29] sm:$0xff]  ;;  %v446_v22 = vld [vmem:[%s411_s29 + $0x8] sm:$0xff]  ;;  %s421_s17 = scalar_lea.vmem %s1824_s6, %s1662_s11  ;;  %v1406_v3 = vld [vmem:[%s1702_s24 + $0x18] sm:$0xff]  ;;  %s1592_s11 = smov 8  }
  0x13   : > { %447 = vst.msk [vmem:[%s1726_s15] sm:$0xff] %vm438_vm1, %v445_v21  ;;  %448 = vst.msk [vmem:[%s1726_s15 + $0x10] sm:$0xff] %vm438_vm1, %v446_v22  ;;  %v1396_v35 = vld [vmem:[%s1702_s24 + $0x8] sm:$0xff]  ;;  %v1128_v22 = vld [vmem:[%s1822_s4 + $0x10] sm:$0xff]  ;;  %s1387_s28 = sshll.u32 %s1831_s10, 3 }
  0x14   : > { %v1127_v21 = vld [vmem:[%s1822_s4 + $0x8] sm:$0xff]  ;;  %s425_s14 = scalar_lea.vmem %s1825_s7, %s1387_s28 }
  0x18   : > { %v441_v4 = vld [vmem:[%s416_s21 + $0x8] sm:$0xff]  ;;  %v442_v5 = vld [vmem:[%s416_s21 + $0x18] sm:$0xff]  ;;  %v453_v6 = vld [vmem:[%s1674_s18] sm:$0xff] }
  0x19   : > { %443 = vst.msk [vmem:[%s1674_s18 + $0x8] sm:$0xff] %vm438_vm1, %v441_v4  ;;  %444 = vst.msk [vmem:[%s1674_s18 + $0x18] sm:$0xff] %vm438_vm1, %v442_v5  ;;  %v455_v28 = vld [vmem:[%s1674_s18 + $0x10] sm:$0xff] }
  0x1a   : > { %v449_v23 = vld [vmem:[%s421_s17 + $0x8] sm:$0xff]  ;;  %v450_v24 = vld [vmem:[%s421_s17 + $0x18] sm:$0xff]  ;;  %v457_v25 = vld [vmem:[%s1726_s15] sm:$0xff] }
  0x1b   : > { %451 = vst.msk [vmem:[%s1726_s15 + $0x8] sm:$0xff] %vm438_vm1, %v449_v23  ;;  %452 = vst.msk [vmem:[%s1726_s15 + $0x18] sm:$0xff] %vm438_vm1, %v450_v24  ;;  %v459_v56 = vld [vmem:[%s1726_s15 + $0x10] sm:$0xff]  ;;  %v1129_v24 = vld [vmem:[%s1822_s4 + $0x18] sm:$0xff] }
  0x20   : > { %v454_v7 = vld [vmem:[%s1674_s18 + $0x8] sm:$0xff]  ;;  %v456_v29 = vld [vmem:[%s1674_s18 + $0x18] sm:$0xff]  ;;  %s1593_s18 = smov 16  }
  0x21   : > { %v1518_v9 = vpack.c.bf16 %v454_v7, %v453_v6  ;;  %v1745_v30 = vpack.c.bf16 %v456_v29, %v455_v28 }
  0x22   : > { %v458_v26 = vld [vmem:[%s1726_s15 + $0x8] sm:$0xff]  ;;  %v460_v57 = vld [vmem:[%s1726_s15 + $0x18] sm:$0xff] }
  0x23   : > { %1520 = vmatpush3.bf16.xpose.msk.msra.mxu0 %vm1692_vm2, %v1518_v9  ;;  %v1522_v27 = vpack.c.bf16 %v458_v26, %v457_v25  ;;  %v1536_v58 = vpack.c.bf16 %v460_v57, %v459_v56  ;;  %v1549_v25 = vpack.c.bf16 %v1129_v24, %v1128_v22 }
  0x24   : > { %1531 = vmatprep.subr.bf16.mxu0 %v1589_v0 }
  0x25   : > { %1523 = vmatpush3.bf16.msra.mxu1 %v1522_v27 }
  0x26   : > { %1524 = vmatprep.subr.bf16.mxu1 %v1589_v0 }
  0x2a   : > { %1455 = vmatmul.mubr.msk.f32.vlgmr.msra.gmra.mrb[0].mxu0 %vm438_vm1, %v462_v10 }
  0x2b   : > { %1482 = vmatprep.mubr.msk.f32.mxu0 %vm1590_vm0, %v1591_v1  ;;  %1534 = vmatpush3.bf16.xpose.msk.msra.mxu0 %vm1692_vm2, %v1745_v30 }
  0x2c   : > { %1542 = vmatprep.subr.bf16.mxu0 %v1589_v0 }
  0x32   : > { %1483 = vmatmul.mubr.msk.f32.vlgmr.msra.gmra.mrb[2].mxu0 %vm438_vm1, %v1401_v31 }
  0x33   : > { %1503 = vmatprep.mubr.msk.f32.mxu0 %vm1590_vm0, %v1591_v1  ;;  %1544 = vmatpush3.bf16.msra.mxu0 %v1536_v58 }
  0x34   : > { %1545 = vmatprep.subr.bf16.mxu0 %v1589_v0 }
  0xfd   : > { %v538_v12 = vpop.f32.mrb[0].mxu0 }
  0xfe   : > { %v539_v13 = vadd.f32 %v538_v12, %v1712_v11  ;;  %v1456_v14 = vpop.f32.mrb[1].mxu0 }
 0x100   : > { %v543_v15 = vsel %vm542_vm3, %v539_v13, -inf }
 0x101   : > { %544 = vmax.xlane.f32.xlu0 %v543_v15 }
 0x105   : > { %v863_v36 = vpop.f32.mrb[2].mxu0 }
 0x106   : > { %v1484_v37 = vpop.f32.mrb[3].mxu0  ;;  %v864_v43 = vadd.f32 %v863_v36, %v1712_v11 }
 0x108   : > { %v867_v45 = vsel %vm542_vm3, %v864_v43, -inf }
 0x18e   : > { %v545_v16 = vpop.xlane.xlu0 %544 }
 0x18f   : > { %v546_v17 = vsub.f32 %v539_v13, %v545_v16 }
 0x191   : > { %v547_v18 = vmul.f32 1.442695, %v546_v17 }
 0x193   : > { %1565 = vpow2.f32 %v547_v18 }
 0x19d   : > { %v1566_v19 = vpop.eup %1565 }
 0x19e   : > { %v549_v20 = vsel %vm542_vm3, %v1566_v19, 0.0 }
 0x19f   : > { %550 = vadd.xlane.f32.xlu0 %v549_v20  ;;  %v1126_v20 = vld [vmem:[%s1822_s4] sm:$0xff] }
 0x1a0   : > { %v1546_v23 = vpack.c.bf16 %v1127_v21, %v1126_v20 }
 0x22c   : > { %v551_v32 = vpop.xlane.xlu0 %550 }
 0x22d   : > { %1567 = vrcp.f32 %v551_v32 }
 0x237   : > { %v1568_v33 = vpop.eup %1567 }
 0x238   : > { %v553_v34 = vmul.f32 %v1568_v33, %v1566_v19 }
 0x23a   : > { %1462 = vmatmul.mubr.msk.f32.vlgmr.msra.gmra.mrb[0].mxu1 %vm542_vm3, %v553_v34 }
 0x23b   : > { %1527 = vmatpush3.bf16.xpose.msk.msra.mxu1 %vm1692_vm2, %v1518_v9  ;;  %1468 = vmatprep.mubr.msk.f32.mxu1 %vm1590_vm0, %v1591_v1 }
 0x23c   : > { %1528 = vmatprep.subr.bf16.mxu1 %v1589_v0 }
 0x242   : > { %1469 = vmatmul.mubr.msk.f32.vlgmr.msra.gmra.mrb[2].mxu1 %vm438_vm1, %v1396_v35 }
 0x243   : > { %1530 = vmatpush3.bf16.msra.mxu1 %v1522_v27  ;;  %1475 = vmatprep.mubr.msk.f32.mxu1 %vm1590_vm0, %v1591_v1 }
 0x244   : > { %1535 = vmatprep.subr.bf16.mxu1 %v1589_v0 }
 0x30d   : > { %v1766_v38 = vpop.f32.mrb[0].mxu1 }
 0x30e   : > { %v1463_v39 = vpop.f32.mrb[1].mxu1 }
 0x315   : > { %v698_v40 = vpop.f32.mrb[2].mxu1 }
 0x316   : > { %v699_v41 = vadd.f32 %v698_v40, %v1712_v11  ;;  %v1470_v42 = vpop.f32.mrb[3].mxu1 }
 0x318   : > { %v702_v44 = vsel %vm542_vm3, %v699_v41, -inf }
 0x319   : > { %703 = vmax.xlane.f32.xlu1 %v702_v44 }
 0x31d   : > { %868 = vmax.xlane.f32.xlu1 %v867_v45 }
 0x3a6   : > { %v704_v46 = vpop.xlane.xlu1 %703 }
 0x3a7   : > { %v705_v47 = vsub.f32 %v699_v41, %v704_v46 }
 0x3a9   : > { %v706_v48 = vmul.f32 1.442695, %v705_v47 }
 0x3aa   : > { %v869_v49 = vpop.xlane.xlu1 %868 }
 0x3ab   : > { %1569 = vpow2.f32 %v706_v48  ;;  %v870_v50 = vsub.f32 %v864_v43, %v869_v49 }
 0x3ad   : > { %v871_v51 = vmul.f32 1.442695, %v870_v50 }
 0x3af   : > { %1571 = vpow2.f32 %v871_v51 }
 0x3b5   : > { %v1570_v52 = vpop.eup %1569 }
 0x3b6   : > { %v708_v53 = vsel %vm542_vm3, %v1570_v52, 0.0 }
 0x3b7   : > { %709 = vadd.xlane.f32.xlu0 %v708_v53 }
 0x3b9   : > { %v1572_v54 = vpop.eup %1571 }
 0x3ba   : > { %v873_v55 = vsel %vm542_vm3, %v1572_v54, 0.0 }
 0x3bb   : > { %874 = vadd.xlane.f32.xlu1 %v873_v55 }
 0x444   : > { %v710_v59 = vpop.xlane.xlu0 %709 }
 0x445   : > { %1573 = vrcp.f32 %v710_v59 }
 0x448   : > { %v875_v60 = vpop.xlane.xlu1 %874 }
 0x449   : > { %1575 = vrcp.f32 %v875_v60 }
 0x44f   : > { %v1574_v61 = vpop.eup %1573 }
 0x450   : > { %v712_v62 = vmul.f32 %v1574_v61, %v1570_v52 }
 0x452   : > { %1476 = vmatmul.mubr.msk.f32.vlgmr.msra.gmra.mrb[4].mxu1 %vm542_vm3, %v712_v62 }
 0x453   : > { %v1576_v63 = vpop.eup %1575  ;;  %1537 = vmatpush3.bf16.msra.mxu1 %v1536_v58  ;;  %1489 = vmatprep.mubr.msk.f32.mxu1 %vm1590_vm0, %v1591_v1 }
 0x454   : > { %v877_v2 = vmul.f32 %v1576_v63, %v1572_v54  ;;  %1538 = vmatprep.subr.bf16.mxu1 %v1589_v0 }
 0x456   : > { %1490 = vmatmul.mubr.msk.f32.vlgmr.msra.gmra.mrb[6].mxu1 %vm542_vm3, %v877_v2 }
 0x457   : > { %1496 = vmatprep.mubr.msk.f32.mxu1 %vm1590_vm0, %v1591_v1 }
 0x45c   : > { %1541 = vmatpush3.bf16.xpose.msk.msra.mxu1 %vm1692_vm2, %v1745_v30 }
 0x463   : > { %1497 = vmatmul.mubr.msk.f32.vlgmr.msra.gmra.mrb[8].mxu1 %vm438_vm1, %v1406_v3 }
 0x525   : > { %v782_v4 = vpop.f32.mrb[4].mxu1 }
 0x526   : > { %v1477_v5 = vpop.f32.mrb[5].mxu1 }
 0x529   : > { %v947_v6 = vpop.f32.mrb[6].mxu1 }
 0x52a   : > { %v1491_v7 = vpop.f32.mrb[7].mxu1 }
 0x536   : > { %v1022_v9 = vpop.f32.mrb[8].mxu1 }
 0x537   : > { %v1023_v10 = vadd.f32 %v1022_v9, %v1712_v11  ;;  %v1498_v12 = vpop.f32.mrb[9].mxu1 }
 0x539   : > { %v1026_v13 = vsel %vm542_vm3, %v1023_v10, -inf }
 0x53a   : > { %1027 = vmax.xlane.f32.xlu0 %v1026_v13 }
 0x550   : > { %1111 = vrot.lane.b32.xlu0 %v782_v4, %s1592_s11 }
 0x5c7   : > { %v1028_v14 = vpop.xlane.xlu0 %1027 }
 0x5c8   : > { %v1029_v15 = vsub.f32 %v1023_v10, %v1028_v14 }
 0x5ca   : > { %v1030_v8 = vmul.f32 1.442695, %v1029_v15 }
 0x5cb   : > { %v1112_v27 = vpop.permute.xlu0 %1111 }
 0x5cc   : > { %1577 = vpow2.f32 %v1030_v8  ;;  %v1122_v29 = vsel %vm438_vm1, %v1766_v38, %v1112_v27 }
 0x5d6   : > { %v1578_v16 = vpop.eup %1577 }
 0x5d7   : > { %v1032_v17 = vsel %vm542_vm3, %v1578_v16, 0.0 }
 0x5d8   : > { %1033 = vadd.xlane.f32.xlu1 %v1032_v17 }
 0x5e9   : > { %1115 = vrot.lane.b32.xlu1 %v947_v6, %s1593_s18 }
 0x665   : > { %v1034_v18 = vpop.xlane.xlu1 %1033 }
 0x666   : > { %1579 = vrcp.f32 %v1034_v18 }
 0x669   : > { %v1116_v28 = vpop.permute.xlu1 %1115 }
 0x66a   : > { %v1123_v30 = vsel %vm542_vm3, %v1122_v29, %v1116_v28 }
 0x670   : > { %v1580_v19 = vpop.eup %1579 }
 0x671   : > { %v1036_v11 = vmul.f32 %v1580_v19, %v1578_v16 }
 0x673   : > { %1504 = vmatmul.mubr.msk.f32.vlgmr.msra.gmra.mrb[4].mxu0 %vm542_vm3, %v1036_v11 }
 0x674   : > { %1514 = vmatprep.mubr.msk.f32.mxu0 %vm1590_vm0, %v1591_v1  ;;  %1547 = vmatpush3.bf16.msra.mxu0 %v1546_v23 }
 0x675   : > { %1548 = vmatprep.subr.bf16.mxu0 %v1589_v0 }
 0x678   : > { %1550 = vmatpush3.bf16.msra.mxu0 %v1549_v25 }
 0x746   : > { %v1106_v1 = vpop.f32.mrb[4].mxu0 }
 0x747   : > { %1119 = vrot.lane.b32.xlu1 %v1106_v1, %s1594_s27  ;;  %v1505_v26 = vpop.f32.mrb[5].mxu0 }
 0x7b9   : > { %v1120_v31 = vpop.permute.xlu1 %1119 }
 0x7ba   : > { %v1125_v32 = vsel %vm1124_vm4, %v1123_v30, %v1120_v31 }
 0x7bb   : > { %1515 = vmatmul.mubr.msk.f32.vlgmr.msra.gmra.mrb[6].mxu0 %vm1130_vm5, %v1125_v32 }
 0x88e   : > { %v1200_v0 = vpop.f32.mrb[6].mxu0 }
 0x88f   : > { %1204 = vst.msk [vmem:[%s425_s14] sm:$0xff] %vm1130_vm5, %v1200_v0  ;;  %v1516_v33 = vpop.f32.mrb[7].mxu0 }
 0x890 PF: > { %s20_s30 = sadd.s32 1, %s1587_s30  }
 0x891   : > { %p17_p4 = scmp.ge.s32.totalorder %s20_s30, 4  }
 0x893   :  { %19 = sbr.rel (!%p17_p4) target bundleno = 1 (0x1), region = 117 }

// kernel: fwd.17
= control target key start
LH: loop header
LB: loop body
LE: loop exit
PB: predicated region body
PF: predicated region fallthrough
CT: control target
= control target key end

     0   :  { %vm19_vm0 = vcmask 261120   ;;  %s267_s0 = inlined_call_operand.vmem [shape: f32[16,32], index: 0, kind: input, shape index: {}]   ;;  %s268_s1 = inlined_call_operand.vmem [shape: f32[1,32], index: 1, kind: input, shape index: {}]   ;;  %s269_s2 = inlined_call_operand.vmem [shape: f32[32,64], index: 2, kind: input, shape index: {}]   ;;  %s270_s3 = inlined_call_operand.hbm [shape: f32[16,64], index: 3, kind: output, shape index: {}]  }
   0x1   :  { %v15_v0 = vld [vmem:[%s267_s0] sm:$0xff]  ;;  %v16_v1 = vld [vmem:[%s267_s0 + $0x8] sm:$0xff] }
   0x2   :  { %8 = vsyncpa [#allocation3], 0  ;;  %v17_v2 = vmul.f32 %v15_v0, %v15_v0  ;;  %v18_v3 = vmul.f32 %v16_v1, %v16_v1  ;;  %v44_v6 = vld [vmem:[%s269_s2] sm:$0xff]  ;;  %v45_v7 = vld [vmem:[%s269_s2 + $0x8] sm:$0xff]  ;;  %vm129_vm1 = vcmask 523264  }
   0x3   :  { %v46_v8 = vld [vmem:[%s269_s2 + $0x10] sm:$0xff]  ;;  %v168_v9 = vpack.c.bf16 %v45_v7, %v44_v6  ;;  %v47_v10 = vld [vmem:[%s269_s2 + $0x18] sm:$0xff]  ;;  %v148_v19 = vld [vmem:[%s268_s1] ss:$0 sm:$0xff]  ;;  %s207_s2 = smov [#allocation2]  }
   0x4   :  { %v20_v4 = vsel %vm19_vm0, %v17_v2, 0.0  ;;  %v23_v5 = vsel %vm19_vm0, %v18_v3, 0.0  ;;  %v172_v11 = vpack.c.bf16 %v47_v10, %v46_v8  ;;  %s137_s25 = sshll.u32 %s207_s2, 4  ;;  %s138_s25 = int_to_ptr.vmem [resolvable:$true] %s137_s25 }
   0x5   :  { %21 = vadd.xlane.f32.xlu0 %v20_v4  ;;  %169 = vmatprep.subr.bf16.mxu0 %v168_v9  ;;  %s183_s26 = scalar_lea.vmem %s138_s25, 256  ;;  %p188_p1 = scmp.lt.s32.totalorder %s138_s25, %s138_s25 }
   0x6   :  { %171 = vmatpush3.bf16.msra.mxu0 %v168_v9  ;;  %p184_p0 = scmp.ne.s32.totalorder %s138_s25, %s183_s26  ;;  %p189_p2 = scmp.lt.s32.totalorder %s183_s26, %s183_s26 }
   0x7   :  { %173 = vmatprep.subr.bf16.mxu0 %v172_v11 }
   0x8   :  { %p190_p3 = por %p189_p2, %p188_p1 }
   0x9   :  { %24 = vadd.xlane.f32.xlu0 %v23_v5 }
   0xa   :  { %175 = vmatpush3.bf16.msra.mxu0 %v172_v11  ;;  %p191_p4 = pnand %p190_p3, %p184_p0 }
  0x92   :  { %v22_v12 = vpop.xlane.xlu0 %21 }
  0x93   :  { %v27_v13 = vmul.f32 0.03125, %v22_v12 }
  0x95   :  { %v29_v14 = vadd.f32 1e-05, %v27_v13 }
  0x96   :  { %v25_v15 = vpop.xlane.xlu0 %24 }
  0x97   :  { %179 = vrsqrt.f32 %v29_v14  ;;  %v28_v16 = vmul.f32 0.03125, %v25_v15 }
  0x99   :  { %v30_v17 = vadd.f32 1e-05, %v28_v16 }
  0x9b   :  { %181 = vrsqrt.f32 %v30_v17 }
  0xa1   :  { %v180_v18 = vpop.eup %179 }
  0xa2   :  { %v33_v20 = vmul.f32 %v180_v18, %v15_v0 }
  0xa4   :  { %v42_v21 = vmul.f32 %v148_v19, %v33_v20 }
  0xa5   :  { %v182_v22 = vpop.eup %181 }
  0xa6   :  { %v34_v23 = vmul.f32 %v182_v22, %v16_v1  ;;  %165 = vmatprep.mubr.msk.f32.mxu0 %vm19_vm0, %v42_v21 }
  0xa8   :  { %v43_v24 = vmul.f32 %v148_v19, %v34_v23 }
  0xaa   :  { %166 = vmatmul.mubr.msk.f32.vlgmr.msra.gmra.mrb[0].mxu0 %vm19_vm0, %v43_v24 }
 0x17d   :  { %v167_v25 = vpop.f32.mrb[0].mxu0 }
 0x17e   :  { %131 = vst.msk [vmem:[#allocation2 + $0x8] sm:$0xff] %vm129_vm1, %v167_v25  ;;  %v120_v26 = vpop.f32.mrb[1].mxu0 }
 0x17f   :  { %130 = vst.msk [vmem:[#allocation2] sm:$0xff] %vm129_vm1, %v120_v26 }
 0x180   :  { %194 = shalt.err (!%p191_p4)
}
 0x181   :  { %s195_s28 = scalar_lea.hbm %s270_s3, 256 }
 0x182   :  { %p196_p5 = scmp.ne.s32.totalorder %s270_s3, %s195_s28  ;;  %p199_p6 = scmp.lt.u32.totalorder %s195_s28, %s270_s3 }
 0x184   :  { %p201_p7 = pnand %p199_p6, %p196_p5 }
 0x186   :  { %204 = shalt.err (!%p201_p7)
}
 0x187   :  { %s208_s6 = smov 128   ;;  %s209_s7 = smov 8  }
 0x188   :  { %143 = dma.vmem_to_hbm [thread:$0]  %s138_s25, 256, %s270_s3, [#allocation3], %s208_s6, %s208_s6, %s209_s7  }
 0x189   :  { %205 = dma.done.wait [#allocation3], 256  }
 0x18a   :  { %206 = vsyncadd [#allocation3], 4294967040 }
 0x18b   :  { %147 = vsyncpa [#allocation3], 1 }

// kernel: fwd.12
= control target key start
LH: loop header
LB: loop body
LE: loop exit
PB: predicated region body
PF: predicated region fallthrough
CT: control target
= control target key end

     0   :  { %s815_s18 = smov 0   ;;  %s882_s0 = inlined_call_operand.vmem [shape: f32[16,32], index: 0, kind: input, shape index: {}]   ;;  %s883_s1 = inlined_call_operand.vmem [shape: f32[8,16,1], index: 1, kind: input, shape index: {}]   ;;  %s884_s2 = inlined_call_operand.vmem [shape: f32[8,32,64], index: 2, kind: input, shape index: {}]   ;;  %s885_s3 = inlined_call_operand.vmem [shape: f32[8,32,64], index: 3, kind: input, shape index: {}]   ;;  %s886_s4 = inlined_call_operand.vmem [shape: f32[8,64,32], index: 4, kind: input, shape index: {}]   ;;  %s887_s5 = inlined_call_operand.vmem [shape: f32[16,32], index: 5, kind: output, shape index: {}]  }
   0x1 LB: > { %s634_s19 = sadd.s32 4294967295, %s781_s18   ;;  %p637_p0 = scmp.ge.s32.totalorder %s781_s18, 1  ;;  %s781_s18 = sphi %s815_s18, %s15_s18  }
   0x2   : > { %p212_p1 = scmp.lt.s32.totalorder %s781_s18, 9 }
   0x4   : > { %p213_p2 = pnand %p637_p0, %p212_p1 }
   0x5   : > { %p250_p3 = scmp.lt.s32.totalorder (!%p213_p2), %s634_s19, 7  ;;  %p646_p4 = scmp.ne.s32.totalorder (!%p213_p2), %s634_s19, 0 }
   0x6   : > { %216 = sbr.rel (%p213_p2) target bundleno = 494 (0x1ee), region = 40 }
   0xd   : > { %s251_s20 = scalar_select %p250_p3, %s634_s19, 7 }
   0xe   : > { %273 = sbr.rel (%p646_p4) target bundleno = 21 (0x15), region = 44  ;;  %vm274_vm0 = vcmask (!%p646_p4), 261120   ;;  %v783_v0 = vmov (!%p646_p4), 0.0  }
   0xf   : > { %s657_s21 = sshll.u32 %s251_s20, 4  ;;  %s658_s22 = sshll.u32 %s251_s20, 5  ;;  %275 = vst.msk [vmem:[%s887_s5] sm:$0xff] (!%p646_p4), %vm274_vm0, %v783_v0  ;;  %276 = vst.msk [vmem:[%s887_s5 + $0x8] sm:$0xff] (!%p646_p4), %vm274_vm0, %v783_v0 }
  0x10   : > { %s826_s25 = scalar_lea.vmem %s883_s1, %s657_s21  ;;  %s259_s28 = scalar_lea.vmem %s884_s2, %s658_s22 }
  0x11   : > { %s264_s6 = scalar_lea.vmem %s885_s3, %s658_s22  ;;  %s660_s7 = sshll.u32 %s251_s20, 6 }
  0x12   : > { %s837_s10 = scalar_lea.vmem %s886_s4, %s660_s7 }
  0x15 PF: > { %v279_v1 = vld [vmem:[%s259_s28] sm:$0xff]  ;;  %v280_v2 = vld [vmem:[%s259_s28 + $0x8] sm:$0xff]  ;;  %v281_v3 = vld [vmem:[%s259_s28 + $0x10] sm:$0xff]  ;;  %vm283_vm1 = vcmask 261120   ;;  %v784_v28 = vmov 0   ;;  %vm468_vm2 = vcmask 523264  }
  0x16   : > { %v724_v4 = vpack.c.bf16 %v280_v2, %v279_v1  ;;  %v282_v5 = vld [vmem:[%s259_s28 + $0x18] sm:$0xff]  ;;  %v277_v6 = vld [vmem:[%s882_s0] sm:$0xff]  ;;  %v380_v9 = vld [vmem:[%s264_s6 + $0x8] sm:$0xff]  ;;  %766 = vset.pattern.permute.xlu0 %v784_v28 }
  0x17   : > { %v728_v7 = vpack.c.bf16 %v282_v5, %v281_v3  ;;  %691 = vmatprep.mubr.msk.f32.mxu1 %vm283_vm1, %v277_v6  ;;  %v379_v8 = vld [vmem:[%s264_s6] sm:$0xff]  ;;  %v381_v11 = vld [vmem:[%s264_s6 + $0x10] sm:$0xff]  ;;  %v382_v12 = vld [vmem:[%s264_s6 + $0x18] sm:$0xff] }
  0x18   : > { %725 = vmatprep.subr.bf16.mxu1 %v724_v4  ;;  %v732_v10 = vpack.c.bf16 %v380_v9, %v379_v8  ;;  %v278_v13 = vld [vmem:[%s882_s0 + $0x8] sm:$0xff]  ;;  %v736_v14 = vpack.c.bf16 %v382_v12, %v381_v11  ;;  %v460_v15 = vld [vmem:[%s837_s10] sm:$0xff]  ;;  %v462_v18 = vld [vmem:[%s837_s10 + $0x10] sm:$0xff] }
  0x19   : > { %727 = vmatpush3.bf16.msra.mxu1 %v724_v4  ;;  %v461_v16 = vld [vmem:[%s837_s10 + $0x8] sm:$0xff]  ;;  %v463_v19 = vld [vmem:[%s837_s10 + $0x18] sm:$0xff]  ;;  %v464_v21 = vld [vmem:[%s837_s10 + $0x20] sm:$0xff] }
  0x1a   : > { %729 = vmatprep.subr.bf16.mxu1 %v728_v7  ;;  %v740_v17 = vpack.c.bf16 %v461_v16, %v460_v15  ;;  %v744_v20 = vpack.c.bf16 %v463_v19, %v462_v18  ;;  %v465_v22 = vld [vmem:[%s837_s10 + $0x28] sm:$0xff]  ;;  %v466_v24 = vld [vmem:[%s837_s10 + $0x30] sm:$0xff]  ;;  %v467_v25 = vld [vmem:[%s837_s10 + $0x38] sm:$0xff] }
  0x1b   : > { %v748_v23 = vpack.c.bf16 %v465_v22, %v464_v21  ;;  %v752_v26 = vpack.c.bf16 %v467_v25, %v466_v24  ;;  %v552_v27 = vld [vmem:[%s826_s25] sm:$0xff]  ;;  %v553_v29 = vld [vmem:[%s826_s25 + $0x8] sm:$0xff] }
  0x1c   : > { %741 = vmatprep.subr.bf16.mxu0 %v740_v17  ;;  %556 = vperm.xlu0 %766, %v552_v27   ;;  %v551_v49 = vld [vmem:[%s887_s5 + $0x8] sm:$0xff]  ;;  %v550_v52 = vld [vmem:[%s887_s5] sm:$0xff] }
  0x1d   : > { %731 = vmatpush3.bf16.msra.mxu1 %v728_v7  ;;  %743 = vmatpush3.bf16.msra.mxu0 %v740_v17 }
  0x1e   : > { %733 = vmatprep.subr.bf16.mxu1 %v732_v10  ;;  %745 = vmatprep.subr.bf16.mxu0 %v744_v20 }
  0x20   : > { %692 = vmatmul.mubr.msk.f32.vlgmr.msra.gmra.mrb[0].mxu1 %vm283_vm1, %v278_v13  ;;  %561 = vperm.xlu0 %766, %v553_v29  }
  0x21   : > { %735 = vmatpush3.bf16.msra.mxu1 %v732_v10  ;;  %702 = vmatprep.mubr.msk.f32.mxu1 %vm283_vm1, %v277_v6 }
  0x22   : > { %737 = vmatprep.subr.bf16.mxu1 %v736_v14  ;;  %747 = vmatpush3.bf16.msra.mxu0 %v744_v20 }
  0x23   : > { %749 = vmatprep.subr.bf16.mxu0 %v748_v23 }
  0x25   : > { %739 = vmatpush3.bf16.msra.mxu1 %v736_v14 }
  0x26   : > { %751 = vmatpush3.bf16.msra.mxu0 %v748_v23 }
  0x27   : > { %753 = vmatprep.subr.bf16.mxu0 %v752_v26 }
  0x28   : > { %703 = vmatmul.mubr.msk.f32.vlgmr.msra.gmra.mrb[2].mxu1 %vm283_vm1, %v278_v13 }
  0x2a   : > { %755 = vmatpush3.bf16.msra.mxu0 %v752_v26 }
  0x9b   : > { %v557_v46 = vpop.permute.xlu0 %556 }
  0x9f   : > { %v562_v47 = vpop.permute.xlu0 %561 }
  0xf3   : > { %v693_v30 = vpop.f32.mrb[0].mxu1 }
  0xf4   : > { %v650_v31 = vmul.f32 -1.442695, %v693_v30  ;;  %v356_v32 = vpop.f32.mrb[1].mxu1 }
  0xf5   : > { %v649_v33 = vmul.f32 -1.442695, %v356_v32 }
  0xf6   : > { %767 = vpow2.f32 %v650_v31 }
  0xf7   : > { %769 = vpow2.f32 %v649_v33 }
  0xfb   : > { %v704_v34 = vpop.f32.mrb[2].mxu1 }
  0xfc   : > { %v449_v35 = vpop.f32.mrb[3].mxu1 }
 0x100   : > { %v768_v36 = vpop.eup %767 }
 0x101   : > { %v770_v37 = vpop.eup %769  ;;  %v372_v38 = vadd.f32 1.0, %v768_v36 }
 0x102   : > { %v371_v39 = vadd.f32 1.0, %v770_v37 }
 0x103   : > { %771 = vrcp.f32 %v372_v38 }
 0x104   : > { %773 = vrcp.f32 %v371_v39 }
 0x10d   : > { %v772_v40 = vpop.eup %771 }
 0x10e   : > { %v774_v41 = vpop.eup %773  ;;  %v378_v42 = vmul.f32 %v772_v40, %v693_v30 }
 0x10f   : > { %v377_v43 = vmul.f32 %v774_v41, %v356_v32 }
 0x110   : > { %v459_v44 = vmul.f32 %v704_v34, %v378_v42 }
 0x111   : > { %v458_v45 = vmul.f32 %v449_v35, %v377_v43 }
 0x113   : > { %721 = vmatprep.mubr.msk.f32.mxu0 %vm468_vm2, %v458_v45 }
 0x114   : > { %722 = vmatmul.mubr.msk.f32.vlgmr.msra.gmra.mrb[0].mxu0 %vm468_vm2, %v459_v44 }
 0x1e7   : > { %v723_v48 = vpop.f32.mrb[0].mxu0 }
 0x1e8   : > { %v565_v50 = vmul.f32 %v723_v48, %v562_v47  ;;  %v541_v51 = vpop.f32.mrb[1].mxu0 }
 0x1e9   : > { %v564_v53 = vmul.f32 %v557_v46, %v541_v51 }
 0x1ea   : > { %v567_v54 = vadd.f32 %v565_v50, %v551_v49 }
 0x1eb   : > { %v566_v55 = vadd.f32 %v564_v53, %v550_v52 }
 0x1ec   : > { %569 = vst.msk [vmem:[%s887_s5 + $0x8] sm:$0xff] %vm283_vm1, %v567_v54 }
 0x1ed   : > { %568 = vst.msk [vmem:[%s887_s5] sm:$0xff] %vm283_vm1, %v566_v55 }
 0x1ee PF: > { %s15_s18 = sadd.s32 1, %s781_s18  }
 0x1ef   : > { %p12_p5 = scmp.ge.s32.totalorder %s15_s18, 10  }
 0x1f1   :  { %14 = sbr.rel (!%p12_p5) target bundleno = 1 (0x1), region = 79 }

</bundles_post_ra>
